<compile_context>
chip_gen: v7x
topology: tpu7x:2x2x1
jax: 0.10.0
libtpu: 0.0.40
codegen_flags: <defaults>
</compile_context>

<pallas_src>
import math

import jax
import jax.numpy as jnp
from jax import lax
from jax.experimental import pallas as pl
from jax.experimental.pallas import tpu as pltpu


# -----------------------------------------------------------------------------
# Fused kernel: conv3x3(pad1)+BN+ReLU  ->  maxpool2x2  ->  conv3x3(pad1)+BN+ReLU
# One batch element per grid step; everything stays in VMEM.
# -----------------------------------------------------------------------------
def _aux_convs_fused_kernel(x_ref, w1_ref, b1_ref, w2_ref, b2_ref,
                            o_ref, xp1_ref, xp2_ref, rowmax_ref):
    """
    x_ref:   (H, W, Cin)        NHWC input tile (unpadded)
    w1_ref:  (9, Cin, C1)       conv12_1 taps (kh*3+kw), BN scale already folded in
    b1_ref:  (1, C1)            folded BN bias
    w2_ref:  (9, C1, C2)        conv12_2 taps, BN scale folded in
    b2_ref:  (1, C2)            folded BN bias
    o_ref:   (H/2, W/2, C2)     output tile
    xp1_ref: (H+2, W+2, Cin)    VMEM scratch: zero-padded conv12_1 input
    xp2_ref: (H/2+2, W/2+2, C1) VMEM scratch: zero-padded conv12_2 input
    rowmax_ref: (H/2, W, C1)    VMEM scratch: H-pooled rows (for stride-2 W pooling)
    """
    H, W, Cin = x_ref.shape
    C1 = w1_ref.shape[-1]
    C2 = w2_ref.shape[-1]
    H2, W2 = H // 2, W // 2

    # ---------------- conv12_1: 3x3, pad=1, Cin -> C1 (scale folded), + bias + ReLU ----------------
    # In-kernel zero padding (no wrapper jnp.pad / extra HBM pass).
    xp1_ref[...] = jnp.zeros_like(xp1_ref)
    xp1_ref[pl.ds(1, H), pl.ds(1, W), :] = x_ref[...]

    # Bias pre-broadcast once (hoisted out of the tap loop) -> epilogue is just a ReLU.
    acc1 = jnp.broadcast_to(b1_ref[...], (H * W, C1)).astype(jnp.float32)
    for kh in range(3):                      # 9 taps -> 9 small MXU matmuls over channels
        for kw in range(3):
            win = xp1_ref[pl.ds(kh, H), pl.ds(kw, W), :]            # (H, W, Cin)
            acc1 = acc1 + jnp.dot(
                win.reshape(H * W, Cin), w1_ref[kh * 3 + kw],
                preferred_element_type=jnp.float32)
    y1 = jnp.maximum(acc1, 0.0)                                     # (H*W, C1)

    # ---------------- 2x2/2 max pool, fused into the conv12_1 epilogue ----------------
    # Pool along H: split the (major) row axis and take a VPU max on data already in vregs.
    y1 = y1.reshape(H2, 2, W, C1)
    rowmax_ref[...] = jnp.maximum(y1[:, 0], y1[:, 1])               # (H2, W, C1)
    # Pool along W: stride-2 reads from the small VMEM scratch.
    pooled = jnp.maximum(rowmax_ref[:, pl.ds(0, W2, 2), :],
                         rowmax_ref[:, pl.ds(1, W2, 2), :])         # (H2, W2, C1)

    # ---------------- conv12_2: 3x3, pad=1, C1 -> C2 (scale folded), + bias + ReLU ----------------
    xp2_ref[...] = jnp.zeros_like(xp2_ref)
    xp2_ref[pl.ds(1, H2), pl.ds(1, W2), :] = pooled

    acc2 = jnp.broadcast_to(b2_ref[...], (H2 * W2, C2)).astype(jnp.float32)
    for kh in range(3):
        for kw in range(3):
            win = xp2_ref[pl.ds(kh, H2), pl.ds(kw, W2), :]          # (H2, W2, C1)
            acc2 = acc2 + jnp.dot(
                win.reshape(H2 * W2, C1), w2_ref[kh * 3 + kw],
                preferred_element_type=jnp.float32)
    y2 = jnp.maximum(acc2, 0.0)                                     # (H2*W2, C2)

    o_ref[...] = y2.reshape(H2, W2, C2).astype(o_ref.dtype)


# -----------------------------------------------------------------------------
# Pallas wrapper
# -----------------------------------------------------------------------------
def auxiliary_convolutions_fused(x_nhwc, params):
    """x_nhwc: (N, H, W, Cin). Returns (N, H/2, W/2, C2) NHWC."""
    N, H, W, Cin = x_nhwc.shape
    C1 = params["w1"].shape[-1]
    C2 = params["w2"].shape[-1]
    H2, W2 = H // 2, W // 2

    # Fold the BN scale into the conv weights (HWIO, scale over O): (x*w)*s + b == x*(w*s) + b.
    w1 = (params["w1"] * params["s1"]).reshape(9, Cin, C1).astype(jnp.float32)
    w2 = (params["w2"] * params["s2"]).reshape(9, C1, C2).astype(jnp.float32)
    b1 = params["b1"].reshape(1, C1).astype(jnp.float32)
    b2 = params["b2"].reshape(1, C2).astype(jnp.float32)

    return pl.pallas_call(
        _aux_convs_fused_kernel,
        out_shape=jax.ShapeDtypeStruct((N, H2, W2, C2), x_nhwc.dtype),
        grid=(N,),
        in_specs=[
            pl.BlockSpec((None, H, W, Cin), lambda n: (n, 0, 0, 0)),
            pl.BlockSpec((9, Cin, C1), lambda n: (0, 0, 0)),
            pl.BlockSpec((1, C1), lambda n: (0, 0)),
            pl.BlockSpec((9, C1, C2), lambda n: (0, 0, 0)),
            pl.BlockSpec((1, C2), lambda n: (0, 0)),
        ],
        out_specs=pl.BlockSpec((None, H2, W2, C2), lambda n: (n, 0, 0, 0)),
        scratch_shapes=[
            pltpu.VMEM((H + 2, W + 2, Cin), jnp.float32),     # padded conv12_1 input
            pltpu.VMEM((H2 + 2, W2 + 2, C1), jnp.float32),    # padded conv12_2 input
            pltpu.VMEM((H2, W, C1), jnp.float32),             # H-pooled rows
        ],
        # "parallel": v7x's 2 TensorCores each take one batch element; no-op on v5e/v6e.
        compiler_params=pltpu.CompilerParams(dimension_semantics=("parallel",)),
    )(x_nhwc, w1, b1, w2, b2)


@jax.jit
def auxiliary_convolutions(fire10_feats_nchw, params):
    """Forward pass matching AuxiliaryConvolutions.forward. Input/output are NCHW."""
    x = jnp.transpose(fire10_feats_nchw, (0, 2, 3, 1))      # NCHW -> NHWC (layout glue, 32 KB)
    y = auxiliary_convolutions_fused(x, params)             # (N, H/2, W/2, C2)
    return jnp.transpose(y, (0, 3, 1, 2))                   # NHWC -> NCHW


# -----------------------------------------------------------------------------
# Deterministic parameter construction (synthetic; no checkpoint loading)
# -----------------------------------------------------------------------------
def _xavier_uniform(key, kh, kw, cin, cout):
    fan_in, fan_out = cin * kh * kw, cout * kh * kw
    bound = math.sqrt(6.0 / (fan_in + fan_out))
    return jax.random.uniform(key, (kh, kw, cin, cout), jnp.float32, -bound, bound)


def _folded_bn(key, cout, eps=1e-5):
    kg, kb, km, kv = jax.random.split(key, 4)
    gamma = 1.0 + 0.1 * jax.random.normal(kg, (cout,), jnp.float32)
    beta = 0.1 * jax.random.normal(kb, (cout,), jnp.float32)
    mean = 0.05 * jax.random.normal(km, (cout,), jnp.float32)
    var = 0.9 + 0.1 * jnp.abs(jax.random.normal(kv, (cout,), jnp.float32))
    scale = gamma / jnp.sqrt(var + eps)
    bias = beta - mean * scale
    return scale, bias


def make_params(key):
    k1, k2, k3, k4 = jax.random.split(key, 4)
    w1 = _xavier_uniform(k1, 3, 3, 16, 8)   # conv12_1: 16 -> 8
    s1, b1 = _folded_bn(k2, 8)
    w2 = _xavier_uniform(k3, 3, 3, 8, 8)    # conv12_2: 8 -> 8
    s2, b2 = _folded_bn(k4, 8)
    return {"w1": w1, "s1": s1, "b1": b1, "w2": w2, "s2": s2, "b2": b2}


# -----------------------------------------------------------------------------
# Pure-JAX reference (unfused BN, for correctness check of the scale folding too)
# -----------------------------------------------------------------------------
def ref_forward(x_nchw, params):
    def conv_bn_relu(x, w_hwio, s, b):
        w_oihw = jnp.transpose(w_hwio, (3, 2, 0, 1))
        y = lax.conv_general_dilated(
            x, w_oihw, (1, 1), ((1, 1), (1, 1)),
            dimension_numbers=("NCHW", "OIHW", "NCHW"))
        y = y * s[None, :, None, None] + b[None, :, None, None]
        return jnp.maximum(y, 0.0)

    y = conv_bn_relu(x_nchw, params["w1"], params["s1"], params["b1"])
    y = lax.reduce_window(y, -jnp.inf, lax.max, (1, 1, 2, 2), (1, 1, 2, 2), "VALID")
    y = conv_bn_relu(y, params["w2"], params["s2"], params["b2"])
    return y


# -----------------------------------------------------------------------------
if __name__ == "__main__":
    key = jax.random.PRNGKey(0)
    kx, kp = jax.random.split(key)

    # fire10_feats: (N=2, C=16, H=16, W=16) -- NCHW, as the PyTorch module expects.
    x = jax.random.normal(kx, (2, 16, 16, 16), jnp.float32)
    params = make_params(kp)

    out = jax.block_until_ready(auxiliary_convolutions(x, params))
    assert out.shape == (2, 8, 8, 8), out.shape

    ref = jax.block_until_ready(ref_forward(x, params))
    assert jnp.allclose(out, ref, atol=1e-4, rtol=1e-4), float(jnp.max(jnp.abs(out - ref)))

    print("KERNEL_OK")
</pallas_src>

<mosaic_0001>
module attributes {stable_mosaic.version = 11 : i64} {
  func.func @_aux_convs_fused_kernel(%arg0: i32, %arg1: memref<1x16x16x16xf32, #tpu.memory_space<vmem>>, %arg2: memref<9x16x8xf32, #tpu.memory_space<vmem>>, %arg3: memref<1x8xf32, #tpu.memory_space<vmem>>, %arg4: memref<9x8x8xf32, #tpu.memory_space<vmem>>, %arg5: memref<1x8xf32, #tpu.memory_space<vmem>>, %arg6: memref<1x8x8x8xf32, #tpu.memory_space<vmem>>, %arg7: memref<18x18x16xf32, #tpu.memory_space<vmem>>, %arg8: memref<10x10x8xf32, #tpu.memory_space<vmem>>, %arg9: memref<8x16x8xf32, #tpu.memory_space<vmem>>) attributes {dimension_semantics = [#tpu.dimension_semantics<parallel>], iteration_bounds = array<i64: 2>, scalar_prefetch = 0 : i64, scratch_operands = 3 : i64, tpu.core_type = #tpu.core_type<tc>, window_params = [{transform_indices = @transform_0, window_bounds = array<i64: 1, 16, 16, 16>}, {pipeline_mode = #tpu.pipeline_mode<synchronous>, transform_indices = @transform_1, window_bounds = array<i64: 9, 16, 8>}, {pipeline_mode = #tpu.pipeline_mode<synchronous>, transform_indices = @transform_2, window_bounds = array<i64: 1, 8>}, {pipeline_mode = #tpu.pipeline_mode<synchronous>, transform_indices = @transform_3, window_bounds = array<i64: 9, 8, 8>}, {pipeline_mode = #tpu.pipeline_mode<synchronous>, transform_indices = @transform_4, window_bounds = array<i64: 1, 8>}, {transform_indices = @transform_5, window_bounds = array<i64: 1, 8, 8, 8>}]} {
    %cst = arith.constant 0.000000e+00 : f32
    %0 = vector.broadcast %cst : f32 to vector<18x18x16xf32>
    %c0 = arith.constant 0 : index
    %c0_0 = arith.constant 0 : index
    %c0_1 = arith.constant 0 : index
    %1 = vector.load %arg7[%c0, %c0_0, %c0_1] : memref<18x18x16xf32, #tpu.memory_space<vmem>>, vector<18x18x16xf32>
    tpu.vector_store %arg7[%c0, %c0_0, %c0_1], %0 {strides = array<i32>} : memref<18x18x16xf32, #tpu.memory_space<vmem>>, vector<18x18x16xf32>,
    %c0_2 = arith.constant 0 : index
    %c0_3 = arith.constant 0 : index
    %c0_4 = arith.constant 0 : index
    %c0_5 = arith.constant 0 : index
    %2 = vector.load %arg1[%c0_2, %c0_3, %c0_4, %c0_5] : memref<1x16x16x16xf32, #tpu.memory_space<vmem>>, vector<1x16x16x16xf32>
    %3 = vector.shape_cast %2 : vector<1x16x16x16xf32> to vector<16x16x16xf32>
    %c1 = arith.constant 1 : index
    %c1_6 = arith.constant 1 : index
    %c0_7 = arith.constant 0 : index
    %4 = vector.load %arg7[%c1, %c1_6, %c0_7] : memref<18x18x16xf32, #tpu.memory_space<vmem>>, vector<16x16x16xf32>
    tpu.vector_store %arg7[%c1, %c1_6, %c0_7], %3 {strides = array<i32>} : memref<18x18x16xf32, #tpu.memory_space<vmem>>, vector<16x16x16xf32>,
    %c0_8 = arith.constant 0 : index
    %c0_9 = arith.constant 0 : index
    %5 = vector.load %arg3[%c0_8, %c0_9] : memref<1x8xf32, #tpu.memory_space<vmem>>, vector<1x8xf32>
    %6 = vector.shape_cast %5 : vector<1x8xf32> to vector<1x8xf32>
    %7 = vector.broadcast %6 : vector<1x8xf32> to vector<256x8xf32>
    %c0_10 = arith.constant 0 : index
    %c0_11 = arith.constant 0 : index
    %c0_12 = arith.constant 0 : index
    %8 = vector.load %arg7[%c0_10, %c0_11, %c0_12] : memref<18x18x16xf32, #tpu.memory_space<vmem>>, vector<16x16x16xf32>
    %9 = vector.shape_cast %8 : vector<16x16x16xf32> to vector<256x16xf32>
    %c0_13 = arith.constant 0 : index
    %c0_14 = arith.constant 0 : index
    %c0_15 = arith.constant 0 : index
    %10 = vector.load %arg2[%c0_13, %c0_14, %c0_15] : memref<9x16x8xf32, #tpu.memory_space<vmem>>, vector<1x16x8xf32>
    %11 = vector.shape_cast %10 : vector<1x16x8xf32> to vector<16x8xf32>
    %cst_16 = arith.constant dense<0.000000e+00> : vector<256x8xf32>
    %12 = tpu.matmul %9, %11, %cst_16 {dimension_numbers = #tpu.dot_dimension_numbers<[1], [0], [0], [1], [0, 0, 1, 1], [], []>} : vector<256x16xf32>, vector<16x8xf32>, vector<256x8xf32> -> vector<256x8xf32>
    %13 = arith.addf %7, %12 : vector<256x8xf32>
    %c0_17 = arith.constant 0 : index
    %c1_18 = arith.constant 1 : index
    %c0_19 = arith.constant 0 : index
    %14 = vector.load %arg7[%c0_17, %c1_18, %c0_19] : memref<18x18x16xf32, #tpu.memory_space<vmem>>, vector<16x16x16xf32>
    %15 = vector.shape_cast %14 : vector<16x16x16xf32> to vector<256x16xf32>
    %c1_20 = arith.constant 1 : index
    %c0_21 = arith.constant 0 : index
    %c0_22 = arith.constant 0 : index
    %16 = vector.load %arg2[%c1_20, %c0_21, %c0_22] : memref<9x16x8xf32, #tpu.memory_space<vmem>>, vector<1x16x8xf32>
    %17 = vector.shape_cast %16 : vector<1x16x8xf32> to vector<16x8xf32>
    %cst_23 = arith.constant dense<0.000000e+00> : vector<256x8xf32>
    %18 = tpu.matmul %15, %17, %cst_23 {dimension_numbers = #tpu.dot_dimension_numbers<[1], [0], [0], [1], [0, 0, 1, 1], [], []>} : vector<256x16xf32>, vector<16x8xf32>, vector<256x8xf32> -> vector<256x8xf32>
    %19 = arith.addf %13, %18 : vector<256x8xf32>
    %c0_24 = arith.constant 0 : index
    %c2 = arith.constant 2 : index
    %c0_25 = arith.constant 0 : index
    %20 = vector.load %arg7[%c0_24, %c2, %c0_25] : memref<18x18x16xf32, #tpu.memory_space<vmem>>, vector<16x16x16xf32>
    %21 = vector.shape_cast %20 : vector<16x16x16xf32> to vector<256x16xf32>
    %c2_26 = arith.constant 2 : index
    %c0_27 = arith.constant 0 : index
    %c0_28 = arith.constant 0 : index
    %22 = vector.load %arg2[%c2_26, %c0_27, %c0_28] : memref<9x16x8xf32, #tpu.memory_space<vmem>>, vector<1x16x8xf32>
    %23 = vector.shape_cast %22 : vector<1x16x8xf32> to vector<16x8xf32>
    %cst_29 = arith.constant dense<0.000000e+00> : vector<256x8xf32>
    %24 = tpu.matmul %21, %23, %cst_29 {dimension_numbers = #tpu.dot_dimension_numbers<[1], [0], [0], [1], [0, 0, 1, 1], [], []>} : vector<256x16xf32>, vector<16x8xf32>, vector<256x8xf32> -> vector<256x8xf32>
    %25 = arith.addf %19, %24 : vector<256x8xf32>
    %c1_30 = arith.constant 1 : index
    %c0_31 = arith.constant 0 : index
    %c0_32 = arith.constant 0 : index
    %26 = vector.load %arg7[%c1_30, %c0_31, %c0_32] : memref<18x18x16xf32, #tpu.memory_space<vmem>>, vector<16x16x16xf32>
    %27 = vector.shape_cast %26 : vector<16x16x16xf32> to vector<256x16xf32>
    %c3 = arith.constant 3 : index
    %c0_33 = arith.constant 0 : index
    %c0_34 = arith.constant 0 : index
    %28 = vector.load %arg2[%c3, %c0_33, %c0_34] : memref<9x16x8xf32, #tpu.memory_space<vmem>>, vector<1x16x8xf32>
    %29 = vector.shape_cast %28 : vector<1x16x8xf32> to vector<16x8xf32>
    %cst_35 = arith.constant dense<0.000000e+00> : vector<256x8xf32>
    %30 = tpu.matmul %27, %29, %cst_35 {dimension_numbers = #tpu.dot_dimension_numbers<[1], [0], [0], [1], [0, 0, 1, 1], [], []>} : vector<256x16xf32>, vector<16x8xf32>, vector<256x8xf32> -> vector<256x8xf32>
    %31 = arith.addf %25, %30 : vector<256x8xf32>
    %c1_36 = arith.constant 1 : index
    %c1_37 = arith.constant 1 : index
    %c0_38 = arith.constant 0 : index
    %32 = vector.load %arg7[%c1_36, %c1_37, %c0_38] : memref<18x18x16xf32, #tpu.memory_space<vmem>>, vector<16x16x16xf32>
    %33 = vector.shape_cast %32 : vector<16x16x16xf32> to vector<256x16xf32>
    %c4 = arith.constant 4 : index
    %c0_39 = arith.constant 0 : index
    %c0_40 = arith.constant 0 : index
    %34 = vector.load %arg2[%c4, %c0_39, %c0_40] : memref<9x16x8xf32, #tpu.memory_space<vmem>>, vector<1x16x8xf32>
    %35 = vector.shape_cast %34 : vector<1x16x8xf32> to vector<16x8xf32>
    %cst_41 = arith.constant dense<0.000000e+00> : vector<256x8xf32>
    %36 = tpu.matmul %33, %35, %cst_41 {dimension_numbers = #tpu.dot_dimension_numbers<[1], [0], [0], [1], [0, 0, 1, 1], [], []>} : vector<256x16xf32>, vector<16x8xf32>, vector<256x8xf32> -> vector<256x8xf32>
    %37 = arith.addf %31, %36 : vector<256x8xf32>
    %c1_42 = arith.constant 1 : index
    %c2_43 = arith.constant 2 : index
    %c0_44 = arith.constant 0 : index
    %38 = vector.load %arg7[%c1_42, %c2_43, %c0_44] : memref<18x18x16xf32, #tpu.memory_space<vmem>>, vector<16x16x16xf32>
    %39 = vector.shape_cast %38 : vector<16x16x16xf32> to vector<256x16xf32>
    %c5 = arith.constant 5 : index
    %c0_45 = arith.constant 0 : index
    %c0_46 = arith.constant 0 : index
    %40 = vector.load %arg2[%c5, %c0_45, %c0_46] : memref<9x16x8xf32, #tpu.memory_space<vmem>>, vector<1x16x8xf32>
    %41 = vector.shape_cast %40 : vector<1x16x8xf32> to vector<16x8xf32>
    %cst_47 = arith.constant dense<0.000000e+00> : vector<256x8xf32>
    %42 = tpu.matmul %39, %41, %cst_47 {dimension_numbers = #tpu.dot_dimension_numbers<[1], [0], [0], [1], [0, 0, 1, 1], [], []>} : vector<256x16xf32>, vector<16x8xf32>, vector<256x8xf32> -> vector<256x8xf32>
    %43 = arith.addf %37, %42 : vector<256x8xf32>
    %c2_48 = arith.constant 2 : index
    %c0_49 = arith.constant 0 : index
    %c0_50 = arith.constant 0 : index
    %44 = vector.load %arg7[%c2_48, %c0_49, %c0_50] : memref<18x18x16xf32, #tpu.memory_space<vmem>>, vector<16x16x16xf32>
    %45 = vector.shape_cast %44 : vector<16x16x16xf32> to vector<256x16xf32>
    %c6 = arith.constant 6 : index
    %c0_51 = arith.constant 0 : index
    %c0_52 = arith.constant 0 : index
    %46 = vector.load %arg2[%c6, %c0_51, %c0_52] : memref<9x16x8xf32, #tpu.memory_space<vmem>>, vector<1x16x8xf32>
    %47 = vector.shape_cast %46 : vector<1x16x8xf32> to vector<16x8xf32>
    %cst_53 = arith.constant dense<0.000000e+00> : vector<256x8xf32>
    %48 = tpu.matmul %45, %47, %cst_53 {dimension_numbers = #tpu.dot_dimension_numbers<[1], [0], [0], [1], [0, 0, 1, 1], [], []>} : vector<256x16xf32>, vector<16x8xf32>, vector<256x8xf32> -> vector<256x8xf32>
    %49 = arith.addf %43, %48 : vector<256x8xf32>
    %c2_54 = arith.constant 2 : index
    %c1_55 = arith.constant 1 : index
    %c0_56 = arith.constant 0 : index
    %50 = vector.load %arg7[%c2_54, %c1_55, %c0_56] : memref<18x18x16xf32, #tpu.memory_space<vmem>>, vector<16x16x16xf32>
    %51 = vector.shape_cast %50 : vector<16x16x16xf32> to vector<256x16xf32>
    %c7 = arith.constant 7 : index
    %c0_57 = arith.constant 0 : index
    %c0_58 = arith.constant 0 : index
    %52 = vector.load %arg2[%c7, %c0_57, %c0_58] : memref<9x16x8xf32, #tpu.memory_space<vmem>>, vector<1x16x8xf32>
    %53 = vector.shape_cast %52 : vector<1x16x8xf32> to vector<16x8xf32>
    %cst_59 = arith.constant dense<0.000000e+00> : vector<256x8xf32>
    %54 = tpu.matmul %51, %53, %cst_59 {dimension_numbers = #tpu.dot_dimension_numbers<[1], [0], [0], [1], [0, 0, 1, 1], [], []>} : vector<256x16xf32>, vector<16x8xf32>, vector<256x8xf32> -> vector<256x8xf32>
    %55 = arith.addf %49, %54 : vector<256x8xf32>
    %c2_60 = arith.constant 2 : index
    %c2_61 = arith.constant 2 : index
    %c0_62 = arith.constant 0 : index
    %56 = vector.load %arg7[%c2_60, %c2_61, %c0_62] : memref<18x18x16xf32, #tpu.memory_space<vmem>>, vector<16x16x16xf32>
    %57 = vector.shape_cast %56 : vector<16x16x16xf32> to vector<256x16xf32>
    %c8 = arith.constant 8 : index
    %c0_63 = arith.constant 0 : index
    %c0_64 = arith.constant 0 : index
    %58 = vector.load %arg2[%c8, %c0_63, %c0_64] : memref<9x16x8xf32, #tpu.memory_space<vmem>>, vector<1x16x8xf32>
    %59 = vector.shape_cast %58 : vector<1x16x8xf32> to vector<16x8xf32>
    %cst_65 = arith.constant dense<0.000000e+00> : vector<256x8xf32>
    %60 = tpu.matmul %57, %59, %cst_65 {dimension_numbers = #tpu.dot_dimension_numbers<[1], [0], [0], [1], [0, 0, 1, 1], [], []>} : vector<256x16xf32>, vector<16x8xf32>, vector<256x8xf32> -> vector<256x8xf32>
    %61 = arith.addf %55, %60 : vector<256x8xf32>
    %cst_66 = arith.constant 0.000000e+00 : f32
    %62 = vector.broadcast %cst_66 : f32 to vector<256x8xf32>
    %63 = arith.maximumf %61, %62 : vector<256x8xf32>
    %64 = vector.shape_cast %63 : vector<256x8xf32> to vector<8x2x16x8xf32>
    %65 = vector.extract_strided_slice %64 {offsets = [0, 0, 0, 0], sizes = [8, 1, 16, 8], strides = [1, 1, 1, 1]} : vector<8x2x16x8xf32> to vector<8x1x16x8xf32>
    %66 = vector.shape_cast %65 : vector<8x1x16x8xf32> to vector<8x16x8xf32>
    %67 = vector.extract_strided_slice %64 {offsets = [0, 1, 0, 0], sizes = [8, 1, 16, 8], strides = [1, 1, 1, 1]} : vector<8x2x16x8xf32> to vector<8x1x16x8xf32>
    %68 = vector.shape_cast %67 : vector<8x1x16x8xf32> to vector<8x16x8xf32>
    %69 = arith.maximumf %66, %68 : vector<8x16x8xf32>
    %c0_67 = arith.constant 0 : index
    %c0_68 = arith.constant 0 : index
    %c0_69 = arith.constant 0 : index
    %70 = vector.load %arg9[%c0_67, %c0_68, %c0_69] : memref<8x16x8xf32, #tpu.memory_space<vmem>>, vector<8x16x8xf32>
    tpu.vector_store %arg9[%c0_67, %c0_68, %c0_69], %69 {strides = array<i32>} : memref<8x16x8xf32, #tpu.memory_space<vmem>>, vector<8x16x8xf32>,
    %c0_70 = arith.constant 0 : index
    %c0_71 = arith.constant 0 : index
    %c0_72 = arith.constant 0 : index
    %71 = tpu.strided_load %arg9[%c0_70, %c0_71, %c0_72] {strides = array<i32: 1, 2, 1>} : memref<8x16x8xf32, #tpu.memory_space<vmem>>, vector<8x8x8xf32>
    %c0_73 = arith.constant 0 : index
    %c1_74 = arith.constant 1 : index
    %c0_75 = arith.constant 0 : index
    %72 = tpu.strided_load %arg9[%c0_73, %c1_74, %c0_75] {strides = array<i32: 1, 2, 1>} : memref<8x16x8xf32, #tpu.memory_space<vmem>>, vector<8x8x8xf32>
    %73 = arith.maximumf %71, %72 : vector<8x8x8xf32>
    %cst_76 = arith.constant 0.000000e+00 : f32
    %74 = vector.broadcast %cst_76 : f32 to vector<10x10x8xf32>
    %c0_77 = arith.constant 0 : index
    %c0_78 = arith.constant 0 : index
    %c0_79 = arith.constant 0 : index
    %75 = vector.load %arg8[%c0_77, %c0_78, %c0_79] : memref<10x10x8xf32, #tpu.memory_space<vmem>>, vector<10x10x8xf32>
    tpu.vector_store %arg8[%c0_77, %c0_78, %c0_79], %74 {strides = array<i32>} : memref<10x10x8xf32, #tpu.memory_space<vmem>>, vector<10x10x8xf32>,
    %c1_80 = arith.constant 1 : index
    %c1_81 = arith.constant 1 : index
    %c0_82 = arith.constant 0 : index
    %76 = vector.load %arg8[%c1_80, %c1_81, %c0_82] : memref<10x10x8xf32, #tpu.memory_space<vmem>>, vector<8x8x8xf32>
    tpu.vector_store %arg8[%c1_80, %c1_81, %c0_82], %73 {strides = array<i32>} : memref<10x10x8xf32, #tpu.memory_space<vmem>>, vector<8x8x8xf32>,
    %c0_83 = arith.constant 0 : index
    %c0_84 = arith.constant 0 : index
    %77 = vector.load %arg5[%c0_83, %c0_84] : memref<1x8xf32, #tpu.memory_space<vmem>>, vector<1x8xf32>
    %78 = vector.shape_cast %77 : vector<1x8xf32> to vector<1x8xf32>
    %79 = vector.broadcast %78 : vector<1x8xf32> to vector<64x8xf32>
    %c0_85 = arith.constant 0 : index
    %c0_86 = arith.constant 0 : index
    %c0_87 = arith.constant 0 : index
    %80 = vector.load %arg8[%c0_85, %c0_86, %c0_87] : memref<10x10x8xf32, #tpu.memory_space<vmem>>, vector<8x8x8xf32>
    %81 = vector.shape_cast %80 : vector<8x8x8xf32> to vector<64x8xf32>
    %c0_88 = arith.constant 0 : index
    %c0_89 = arith.constant 0 : index
    %c0_90 = arith.constant 0 : index
    %82 = vector.load %arg4[%c0_88, %c0_89, %c0_90] : memref<9x8x8xf32, #tpu.memory_space<vmem>>, vector<1x8x8xf32>
    %83 = vector.shape_cast %82 : vector<1x8x8xf32> to vector<8x8xf32>
    %cst_91 = arith.constant dense<0.000000e+00> : vector<64x8xf32>
    %84 = tpu.matmul %81, %83, %cst_91 {dimension_numbers = #tpu.dot_dimension_numbers<[1], [0], [0], [1], [0, 0, 1, 1], [], []>} : vector<64x8xf32>, vector<8x8xf32>, vector<64x8xf32> -> vector<64x8xf32>
    %85 = arith.addf %79, %84 : vector<64x8xf32>
    %c0_92 = arith.constant 0 : index
    %c1_93 = arith.constant 1 : index
    %c0_94 = arith.constant 0 : index
    %86 = vector.load %arg8[%c0_92, %c1_93, %c0_94] : memref<10x10x8xf32, #tpu.memory_space<vmem>>, vector<8x8x8xf32>
    %87 = vector.shape_cast %86 : vector<8x8x8xf32> to vector<64x8xf32>
    %c1_95 = arith.constant 1 : index
    %c0_96 = arith.constant 0 : index
    %c0_97 = arith.constant 0 : index
    %88 = vector.load %arg4[%c1_95, %c0_96, %c0_97] : memref<9x8x8xf32, #tpu.memory_space<vmem>>, vector<1x8x8xf32>
    %89 = vector.shape_cast %88 : vector<1x8x8xf32> to vector<8x8xf32>
    %cst_98 = arith.constant dense<0.000000e+00> : vector<64x8xf32>
    %90 = tpu.matmul %87, %89, %cst_98 {dimension_numbers = #tpu.dot_dimension_numbers<[1], [0], [0], [1], [0, 0, 1, 1], [], []>} : vector<64x8xf32>, vector<8x8xf32>, vector<64x8xf32> -> vector<64x8xf32>
    %91 = arith.addf %85, %90 : vector<64x8xf32>
    %c0_99 = arith.constant 0 : index
    %c2_100 = arith.constant 2 : index
    %c0_101 = arith.constant 0 : index
    %92 = vector.load %arg8[%c0_99, %c2_100, %c0_101] : memref<10x10x8xf32, #tpu.memory_space<vmem>>, vector<8x8x8xf32>
    %93 = vector.shape_cast %92 : vector<8x8x8xf32> to vector<64x8xf32>
    %c2_102 = arith.constant 2 : index
    %c0_103 = arith.constant 0 : index
    %c0_104 = arith.constant 0 : index
    %94 = vector.load %arg4[%c2_102, %c0_103, %c0_104] : memref<9x8x8xf32, #tpu.memory_space<vmem>>, vector<1x8x8xf32>
    %95 = vector.shape_cast %94 : vector<1x8x8xf32> to vector<8x8xf32>
    %cst_105 = arith.constant dense<0.000000e+00> : vector<64x8xf32>
    %96 = tpu.matmul %93, %95, %cst_105 {dimension_numbers = #tpu.dot_dimension_numbers<[1], [0], [0], [1], [0, 0, 1, 1], [], []>} : vector<64x8xf32>, vector<8x8xf32>, vector<64x8xf32> -> vector<64x8xf32>
    %97 = arith.addf %91, %96 : vector<64x8xf32>
    %c1_106 = arith.constant 1 : index
    %c0_107 = arith.constant 0 : index
    %c0_108 = arith.constant 0 : index
    %98 = vector.load %arg8[%c1_106, %c0_107, %c0_108] : memref<10x10x8xf32, #tpu.memory_space<vmem>>, vector<8x8x8xf32>
    %99 = vector.shape_cast %98 : vector<8x8x8xf32> to vector<64x8xf32>
    %c3_109 = arith.constant 3 : index
    %c0_110 = arith.constant 0 : index
    %c0_111 = arith.constant 0 : index
    %100 = vector.load %arg4[%c3_109, %c0_110, %c0_111] : memref<9x8x8xf32, #tpu.memory_space<vmem>>, vector<1x8x8xf32>
    %101 = vector.shape_cast %100 : vector<1x8x8xf32> to vector<8x8xf32>
    %cst_112 = arith.constant dense<0.000000e+00> : vector<64x8xf32>
    %102 = tpu.matmul %99, %101, %cst_112 {dimension_numbers = #tpu.dot_dimension_numbers<[1], [0], [0], [1], [0, 0, 1, 1], [], []>} : vector<64x8xf32>, vector<8x8xf32>, vector<64x8xf32> -> vector<64x8xf32>
    %103 = arith.addf %97, %102 : vector<64x8xf32>
    %c1_113 = arith.constant 1 : index
    %c1_114 = arith.constant 1 : index
    %c0_115 = arith.constant 0 : index
    %104 = vector.load %arg8[%c1_113, %c1_114, %c0_115] : memref<10x10x8xf32, #tpu.memory_space<vmem>>, vector<8x8x8xf32>
    %105 = vector.shape_cast %104 : vector<8x8x8xf32> to vector<64x8xf32>
    %c4_116 = arith.constant 4 : index
    %c0_117 = arith.constant 0 : index
    %c0_118 = arith.constant 0 : index
    %106 = vector.load %arg4[%c4_116, %c0_117, %c0_118] : memref<9x8x8xf32, #tpu.memory_space<vmem>>, vector<1x8x8xf32>
    %107 = vector.shape_cast %106 : vector<1x8x8xf32> to vector<8x8xf32>
    %cst_119 = arith.constant dense<0.000000e+00> : vector<64x8xf32>
    %108 = tpu.matmul %105, %107, %cst_119 {dimension_numbers = #tpu.dot_dimension_numbers<[1], [0], [0], [1], [0, 0, 1, 1], [], []>} : vector<64x8xf32>, vector<8x8xf32>, vector<64x8xf32> -> vector<64x8xf32>
    %109 = arith.addf %103, %108 : vector<64x8xf32>
    %c1_120 = arith.constant 1 : index
    %c2_121 = arith.constant 2 : index
    %c0_122 = arith.constant 0 : index
    %110 = vector.load %arg8[%c1_120, %c2_121, %c0_122] : memref<10x10x8xf32, #tpu.memory_space<vmem>>, vector<8x8x8xf32>
    %111 = vector.shape_cast %110 : vector<8x8x8xf32> to vector<64x8xf32>
    %c5_123 = arith.constant 5 : index
    %c0_124 = arith.constant 0 : index
    %c0_125 = arith.constant 0 : index
    %112 = vector.load %arg4[%c5_123, %c0_124, %c0_125] : memref<9x8x8xf32, #tpu.memory_space<vmem>>, vector<1x8x8xf32>
    %113 = vector.shape_cast %112 : vector<1x8x8xf32> to vector<8x8xf32>
    %cst_126 = arith.constant dense<0.000000e+00> : vector<64x8xf32>
    %114 = tpu.matmul %111, %113, %cst_126 {dimension_numbers = #tpu.dot_dimension_numbers<[1], [0], [0], [1], [0, 0, 1, 1], [], []>} : vector<64x8xf32>, vector<8x8xf32>, vector<64x8xf32> -> vector<64x8xf32>
    %115 = arith.addf %109, %114 : vector<64x8xf32>
    %c2_127 = arith.constant 2 : index
    %c0_128 = arith.constant 0 : index
    %c0_129 = arith.constant 0 : index
    %116 = vector.load %arg8[%c2_127, %c0_128, %c0_129] : memref<10x10x8xf32, #tpu.memory_space<vmem>>, vector<8x8x8xf32>
    %117 = vector.shape_cast %116 : vector<8x8x8xf32> to vector<64x8xf32>
    %c6_130 = arith.constant 6 : index
    %c0_131 = arith.constant 0 : index
    %c0_132 = arith.constant 0 : index
    %118 = vector.load %arg4[%c6_130, %c0_131, %c0_132] : memref<9x8x8xf32, #tpu.memory_space<vmem>>, vector<1x8x8xf32>
    %119 = vector.shape_cast %118 : vector<1x8x8xf32> to vector<8x8xf32>
    %cst_133 = arith.constant dense<0.000000e+00> : vector<64x8xf32>
    %120 = tpu.matmul %117, %119, %cst_133 {dimension_numbers = #tpu.dot_dimension_numbers<[1], [0], [0], [1], [0, 0, 1, 1], [], []>} : vector<64x8xf32>, vector<8x8xf32>, vector<64x8xf32> -> vector<64x8xf32>
    %121 = arith.addf %115, %120 : vector<64x8xf32>
    %c2_134 = arith.constant 2 : index
    %c1_135 = arith.constant 1 : index
    %c0_136 = arith.constant 0 : index
    %122 = vector.load %arg8[%c2_134, %c1_135, %c0_136] : memref<10x10x8xf32, #tpu.memory_space<vmem>>, vector<8x8x8xf32>
    %123 = vector.shape_cast %122 : vector<8x8x8xf32> to vector<64x8xf32>
    %c7_137 = arith.constant 7 : index
    %c0_138 = arith.constant 0 : index
    %c0_139 = arith.constant 0 : index
    %124 = vector.load %arg4[%c7_137, %c0_138, %c0_139] : memref<9x8x8xf32, #tpu.memory_space<vmem>>, vector<1x8x8xf32>
    %125 = vector.shape_cast %124 : vector<1x8x8xf32> to vector<8x8xf32>
    %cst_140 = arith.constant dense<0.000000e+00> : vector<64x8xf32>
    %126 = tpu.matmul %123, %125, %cst_140 {dimension_numbers = #tpu.dot_dimension_numbers<[1], [0], [0], [1], [0, 0, 1, 1], [], []>} : vector<64x8xf32>, vector<8x8xf32>, vector<64x8xf32> -> vector<64x8xf32>
    %127 = arith.addf %121, %126 : vector<64x8xf32>
    %c2_141 = arith.constant 2 : index
    %c2_142 = arith.constant 2 : index
    %c0_143 = arith.constant 0 : index
    %128 = vector.load %arg8[%c2_141, %c2_142, %c0_143] : memref<10x10x8xf32, #tpu.memory_space<vmem>>, vector<8x8x8xf32>
    %129 = vector.shape_cast %128 : vector<8x8x8xf32> to vector<64x8xf32>
    %c8_144 = arith.constant 8 : index
    %c0_145 = arith.constant 0 : index
    %c0_146 = arith.constant 0 : index
    %130 = vector.load %arg4[%c8_144, %c0_145, %c0_146] : memref<9x8x8xf32, #tpu.memory_space<vmem>>, vector<1x8x8xf32>
    %131 = vector.shape_cast %130 : vector<1x8x8xf32> to vector<8x8xf32>
    %cst_147 = arith.constant dense<0.000000e+00> : vector<64x8xf32>
    %132 = tpu.matmul %129, %131, %cst_147 {dimension_numbers = #tpu.dot_dimension_numbers<[1], [0], [0], [1], [0, 0, 1, 1], [], []>} : vector<64x8xf32>, vector<8x8xf32>, vector<64x8xf32> -> vector<64x8xf32>
    %133 = arith.addf %127, %132 : vector<64x8xf32>
    %cst_148 = arith.constant 0.000000e+00 : f32
    %134 = vector.broadcast %cst_148 : f32 to vector<64x8xf32>
    %135 = arith.maximumf %133, %134 : vector<64x8xf32>
    %136 = vector.shape_cast %135 : vector<64x8xf32> to vector<8x8x8xf32>
    %c0_149 = arith.constant 0 : index
    %c0_150 = arith.constant 0 : index
    %c0_151 = arith.constant 0 : index
    %c0_152 = arith.constant 0 : index
    %137 = vector.load %arg6[%c0_149, %c0_150, %c0_151, %c0_152] : memref<1x8x8x8xf32, #tpu.memory_space<vmem>>, vector<1x8x8x8xf32>
    %138 = vector.shape_cast %137 : vector<1x8x8x8xf32> to vector<8x8x8xf32>
    %139 = vector.shape_cast %136 : vector<8x8x8xf32> to vector<1x8x8x8xf32>
    tpu.vector_store %arg6[%c0_149, %c0_150, %c0_151, %c0_152], %139 {strides = array<i32>} : memref<1x8x8x8xf32, #tpu.memory_space<vmem>>, vector<1x8x8x8xf32>,
    return
  }
  func.func @transform_0(%arg0: i32) -> (i32, i32, i32, i32) {
    %c0_i32 = arith.constant 0 : i32
    %c0_i32_0 = arith.constant 0 : i32
    %c0_i32_1 = arith.constant 0 : i32
    %c0_i32_2 = arith.constant 0 : i32
    return %arg0, %c0_i32, %c0_i32_0, %c0_i32_1 : i32, i32, i32, i32
  }
  func.func @transform_1(%arg0: i32) -> (i32, i32, i32) {
    %c0_i32 = arith.constant 0 : i32
    %c0_i32_0 = arith.constant 0 : i32
    %c0_i32_1 = arith.constant 0 : i32
    %c0_i32_2 = arith.constant 0 : i32
    return %c0_i32, %c0_i32_0, %c0_i32_1 : i32, i32, i32
  }
  func.func @transform_2(%arg0: i32) -> (i32, i32) {
    %c0_i32 = arith.constant 0 : i32
    %c0_i32_0 = arith.constant 0 : i32
    %c0_i32_1 = arith.constant 0 : i32
    return %c0_i32, %c0_i32_0 : i32, i32
  }
  func.func @transform_3(%arg0: i32) -> (i32, i32, i32) {
    %c0_i32 = arith.constant 0 : i32
    %c0_i32_0 = arith.constant 0 : i32
    %c0_i32_1 = arith.constant 0 : i32
    %c0_i32_2 = arith.constant 0 : i32
    return %c0_i32, %c0_i32_0, %c0_i32_1 : i32, i32, i32
  }
  func.func @transform_4(%arg0: i32) -> (i32, i32) {
    %c0_i32 = arith.constant 0 : i32
    %c0_i32_0 = arith.constant 0 : i32
    %c0_i32_1 = arith.constant 0 : i32
    return %c0_i32, %c0_i32_0 : i32, i32
  }
  func.func @transform_5(%arg0: i32) -> (i32, i32, i32, i32) {
    %c0_i32 = arith.constant 0 : i32
    %c0_i32_0 = arith.constant 0 : i32
    %c0_i32_1 = arith.constant 0 : i32
    %c0_i32_2 = arith.constant 0 : i32
    return %arg0, %c0_i32, %c0_i32_0, %c0_i32_1 : i32, i32, i32, i32
  }
}

</mosaic_0001>

<bundles_post_ra>
// kernel: auxiliary_convolutions.1
= control target key start
LH: loop header
LB: loop body
LE: loop exit
PB: predicated region body
PF: predicated region fallthrough
CT: control target
= control target key end

     0   :  { %s7206_s18 = smov 0   ;;  %s8618_s0 = inlined_call_operand.vmem [shape: f32[2,16,16,16], index: 0, kind: input, shape index: {}]   ;;  %s8619_s1 = inlined_call_operand.vmem [shape: f32[9,16,8], index: 1, kind: input, shape index: {}]   ;;  %s8620_s2 = inlined_call_operand.vmem [shape: f32[1,8], index: 2, kind: input, shape index: {}]   ;;  %s8621_s3 = inlined_call_operand.vmem [shape: f32[9,8,8], index: 3, kind: input, shape index: {}]   ;;  %s8622_s4 = inlined_call_operand.vmem [shape: f32[1,8], index: 4, kind: input, shape index: {}]   ;;  %s8623_s5 = inlined_call_operand.vmem [shape: f32[2,8,8,8], index: 5, kind: output, shape index: {}]  }
   0x1 LB: > { %s5380_s19 = sadd.s32 4294967295, %s7173_s18   ;;  %p5384_p0 = scmp.ge.s32.totalorder %s7173_s18, 1  ;;  %s7173_s18 = sphi %s7206_s18, %s15_s18  }
   0x2   : > { %p187_p1 = scmp.lt.s32.totalorder %s7173_s18, 3 }
   0x4   : > { %p188_p2 = pnand %p5384_p0, %p187_p1 }
   0x6   : > { %191 = sbr.rel (%p188_p2) target bundleno = 981 (0x3d5), region = 40 }
   0xd   : > { %v385_v0 = vld [vmem:[%s8619_s1] sm:$0xff]  ;;  %v386_v1 = vld [vmem:[%s8619_s1 + $0x8] sm:$0xff]  ;;  %vm225_vm0 = vcmask 130048   ;;  %v5490_v2 = vld [vmem:[%s8619_s1 + $0x30] sm:$0xff]  ;;  %p7225_p3 = scmp.lt.s32.totalorder %s5380_s19, 1  ;;  %v8624_v4 = vmov 0.0  }
   0xe   : > { %v7229_v3 = vpack.c.bf16 %v386_v1, %v385_v0  ;;  %226 = vst.msk [vmem:[#allocation2] sm:$0xff] %vm225_vm0, %v8624_v4  ;;  %227 = vst.msk [vmem:[#allocation2 + $0x8] sm:$0xff] %vm225_vm0, %v8624_v4  ;;  %v5491_v5 = vld [vmem:[%s8619_s1 + $0x38] sm:$0xff]  ;;  %v5524_v6 = vld [vmem:[%s8619_s1 + $0x40] sm:$0xff]  ;;  %vm228_vm1 = vcmask 123904   ;;  %vm3893_vm2 = vcmask 64512  }
   0xf   : > { %230 = vst.msk [vmem:[#allocation2 + $0x18] sm:$0xff] %vm225_vm0, %v8624_v4  ;;  %231 = vst.msk [vmem:[#allocation2 + $0x20] sm:$0xff] %vm225_vm0, %v8624_v4  ;;  %v5525_v7 = vld [vmem:[%s8619_s1 + $0x48] sm:$0xff]  ;;  %v7312_v8 = vpack.c.bf16 %v5491_v5, %v5490_v2  ;;  %s8713_s19 = smov (!%p7225_p3, %s5380_s19), 1  ;;  %v5422_v10 = vld [vmem:[%s8619_s1 + $0x10] sm:$0xff]  ;;  %vm3950_vm3 = vcmask 58368  }
  0x10   : > { %233 = vst.msk [vmem:[#allocation2 + $0x30] sm:$0xff] %vm225_vm0, %v8624_v4  ;;  %234 = vst.msk [vmem:[#allocation2 + $0x38] sm:$0xff] %vm225_vm0, %v8624_v4  ;;  %v7320_v9 = vpack.c.bf16 %v5525_v7, %v5524_v6  ;;  %6761 = vmatprep.subr.bf16.mxu1 %v7229_v3  ;;  %v5423_v11 = vld [vmem:[%s8619_s1 + $0x18] sm:$0xff]  ;;  %s5777_s12 = sshll.u32 %s8713_s19, 8  ;;  %v5456_v13 = vld [vmem:[%s8619_s1 + $0x20] sm:$0xff] }
  0x11   : > { %236 = vst.msk [vmem:[#allocation2 + $0x48] sm:$0xff] %vm225_vm0, %v8624_v4  ;;  %237 = vst.msk [vmem:[#allocation2 + $0x50] sm:$0xff] %vm225_vm0, %v8624_v4  ;;  %6763 = vmatpush3.bf16.msra.mxu1 %v7229_v3  ;;  %6773 = vmatprep.subr.bf16.mxu0 %v7312_v8  ;;  %v6764_v12 = vpack.c.bf16 %v5423_v11, %v5422_v10  ;;  %s7372_s15 = scalar_lea.vmem %s8618_s0, %s5777_s12  ;;  %v5457_v14 = vld [vmem:[%s8619_s1 + $0x28] sm:$0xff]  ;;  %v5558_v28 = vld [vmem:[%s8619_s1 + $0x50] sm:$0xff]  ;;  %s5778_s12 = sshll.u32 %s8713_s19, 6 }
  0x12   : > { %239 = vst.msk [vmem:[#allocation2 + $0x60] sm:$0xff] %vm225_vm0, %v8624_v4  ;;  %240 = vst.msk [vmem:[#allocation2 + $0x68] sm:$0xff] %vm225_vm0, %v8624_v4  ;;  %6775 = vmatpush3.bf16.msra.mxu0 %v7312_v8  ;;  %v281_v15 = vld [vmem:[%s7372_s15] sm:$0xff]  ;;  %v282_v16 = vld [vmem:[%s7372_s15 + $0x8] sm:$0xff]  ;;  %v7394_v24 = vpack.c.bf16 %v5457_v14, %v5456_v13 }
  0x13   : > { %242 = vst.msk [vmem:[#allocation2 + $0x78] sm:$0xff] %vm225_vm0, %v8624_v4  ;;  %243 = vst.msk [vmem:[#allocation2 + $0x80] sm:$0xff] %vm225_vm0, %v8624_v4  ;;  %6777 = vmatprep.subr.bf16.mxu0 %v7320_v9  ;;  %v283_v17 = vld [vmem:[%s7372_s15 + $0x10] sm:$0xff]  ;;  %6765 = vmatprep.subr.bf16.mxu1 %v6764_v12  ;;  %v284_v18 = vld [vmem:[%s7372_s15 + $0x18] sm:$0xff] }
  0x14   : > { %245 = vst.msk [vmem:[#allocation2 + $0x90] sm:$0xff] %vm225_vm0, %v8624_v4  ;;  %246 = vst.msk [vmem:[#allocation2 + $0x98] sm:$0xff] %vm225_vm0, %v8624_v4  ;;  %v285_v19 = vld [vmem:[%s7372_s15 + $0x20] sm:$0xff]  ;;  %v286_v20 = vld [vmem:[%s7372_s15 + $0x28] sm:$0xff] }
  0x15   : > { %248 = vst.msk [vmem:[#allocation2 + $0xa8] sm:$0xff] %vm225_vm0, %v8624_v4  ;;  %249 = vst.msk [vmem:[#allocation2 + $0xb0] sm:$0xff] %vm225_vm0, %v8624_v4  ;;  %v353_v21 = vld [vmem:[#allocation2] sm:$0xff]  ;;  %v354_v22 = vld [vmem:[#allocation2 + $0x8] sm:$0xff] }
  0x16   : > { %251 = vst.msk [vmem:[#allocation2 + $0xc0] sm:$0xff] %vm225_vm0, %v8624_v4  ;;  %252 = vst.msk [vmem:[#allocation2 + $0xc8] sm:$0xff] %vm225_vm0, %v8624_v4  ;;  %v287_v23 = vld [vmem:[%s7372_s15 + $0x30] sm:$0xff]  ;;  %6170 = vmatprep.mubr.msk.f32.mxu1 %vm225_vm0, %v353_v21  ;;  %v288_v25 = vld [vmem:[%s7372_s15 + $0x38] sm:$0xff] }
  0x17   : > { %254 = vst.msk [vmem:[#allocation2 + $0xd8] sm:$0xff] %vm225_vm0, %v8624_v4  ;;  %255 = vst.msk [vmem:[#allocation2 + $0xe0] sm:$0xff] %vm225_vm0, %v8624_v4  ;;  %v289_v26 = vld [vmem:[%s7372_s15 + $0x40] sm:$0xff]  ;;  %v290_v27 = vld [vmem:[%s7372_s15 + $0x48] sm:$0xff]  ;;  %6171 = vmatmul.mubr.msk.f32.vlgmr.msra.gmra.mrb[0].mxu1 %vm225_vm0, %v354_v22 }
  0x18   : > { %257 = vst.msk [vmem:[#allocation2 + $0xf0] sm:$0xff] %vm225_vm0, %v8624_v4  ;;  %258 = vst.msk [vmem:[#allocation2 + $0xf8] sm:$0xff] %vm225_vm0, %v8624_v4  ;;  %v5559_v29 = vld [vmem:[%s8619_s1 + $0x58] sm:$0xff]  ;;  %v291_v30 = vld [vmem:[%s7372_s15 + $0x50] sm:$0xff]  ;;  %6767 = vmatpush3.bf16.msra.mxu1 %v6764_v12 }
  0x19   : > { %260 = vst.msk [vmem:[#allocation2 + $0x108] sm:$0xff] %vm225_vm0, %v8624_v4  ;;  %261 = vst.msk [vmem:[#allocation2 + $0x110] sm:$0xff] %vm225_vm0, %v8624_v4  ;;  %v292_v31 = vld [vmem:[%s7372_s15 + $0x58] sm:$0xff]  ;;  %v293_v32 = vld [vmem:[%s7372_s15 + $0x60] sm:$0xff]  ;;  %6769 = vmatprep.subr.bf16.mxu1 %v7394_v24  ;;  %v7437_v45 = vpack.c.bf16 %v5559_v29, %v5558_v28 }
  0x1a   : > { %263 = vst.msk [vmem:[#allocation2 + $0x120] sm:$0xff] %vm225_vm0, %v8624_v4  ;;  %264 = vst.msk [vmem:[#allocation2 + $0x128] sm:$0xff] %vm225_vm0, %v8624_v4  ;;  %v294_v33 = vld [vmem:[%s7372_s15 + $0x68] sm:$0xff]  ;;  %v295_v34 = vld [vmem:[%s7372_s15 + $0x70] sm:$0xff] }
  0x1b   : > { %266 = vst.msk [vmem:[#allocation2 + $0x138] sm:$0xff] %vm225_vm0, %v8624_v4  ;;  %267 = vst.msk [vmem:[#allocation2 + $0x140] sm:$0xff] %vm225_vm0, %v8624_v4  ;;  %v296_v35 = vld [vmem:[%s7372_s15 + $0x78] sm:$0xff]  ;;  %v297_v36 = vld [vmem:[%s7372_s15 + $0x80] sm:$0xff] }
  0x1c   : > { %269 = vst.msk [vmem:[#allocation2 + $0x150] sm:$0xff] %vm225_vm0, %v8624_v4  ;;  %270 = vst.msk [vmem:[#allocation2 + $0x158] sm:$0xff] %vm225_vm0, %v8624_v4  ;;  %v298_v37 = vld [vmem:[%s7372_s15 + $0x88] sm:$0xff]  ;;  %v299_v38 = vld [vmem:[%s7372_s15 + $0x90] sm:$0xff] }
  0x1d   : > { %272 = vst.msk [vmem:[#allocation2 + $0x168] sm:$0xff] %vm225_vm0, %v8624_v4  ;;  %273 = vst.msk [vmem:[#allocation2 + $0x170] sm:$0xff] %vm225_vm0, %v8624_v4  ;;  %v300_v39 = vld [vmem:[%s7372_s15 + $0x98] sm:$0xff]  ;;  %v301_v40 = vld [vmem:[%s7372_s15 + $0xa0] sm:$0xff] }
  0x1e   : > { %275 = vst.msk [vmem:[#allocation2 + $0x180] sm:$0xff] %vm225_vm0, %v8624_v4  ;;  %276 = vst.msk [vmem:[#allocation2 + $0x188] sm:$0xff] %vm225_vm0, %v8624_v4  ;;  %v302_v41 = vld [vmem:[%s7372_s15 + $0xa8] sm:$0xff]  ;;  %v303_v50 = vld [vmem:[%s7372_s15 + $0xb0] sm:$0xff] }
  0x1f   : > { %278 = vst.msk [vmem:[#allocation2 + $0x198] sm:$0xff] %vm225_vm0, %v8624_v4  ;;  %279 = vst.msk [vmem:[#allocation2 + $0x1a0] sm:$0xff] %vm225_vm0, %v8624_v4  ;;  %v304_v51 = vld [vmem:[%s7372_s15 + $0xb8] sm:$0xff]  ;;  %v305_v52 = vld [vmem:[%s7372_s15 + $0xc0] sm:$0xff] }
  0x20   : > { %232 = vst.msk [vmem:[#allocation2 + $0x28] sm:$0x3] %vm228_vm1, %v8624_v4  ;;  %229 = vst.msk [vmem:[#allocation2 + $0x10] sm:$0x3] %vm228_vm1, %v8624_v4  ;;  %v306_v53 = vld [vmem:[%s7372_s15 + $0xc8] sm:$0xff]  ;;  %v307_v54 = vld [vmem:[%s7372_s15 + $0xd0] sm:$0xff] }
  0x21   : > { %235 = vst.msk [vmem:[#allocation2 + $0x40] sm:$0x3] %vm228_vm1, %v8624_v4  ;;  %238 = vst.msk [vmem:[#allocation2 + $0x58] sm:$0x3] %vm228_vm1, %v8624_v4  ;;  %v308_v56 = vld [vmem:[%s7372_s15 + $0xd8] sm:$0xff]  ;;  %v309_v58 = vld [vmem:[%s7372_s15 + $0xe0] sm:$0xff] }
  0x22   : > { %241 = vst.msk [vmem:[#allocation2 + $0x70] sm:$0x3] %vm228_vm1, %v8624_v4  ;;  %244 = vst.msk [vmem:[#allocation2 + $0x88] sm:$0x3] %vm228_vm1, %v8624_v4  ;;  %v310_v59 = vld [vmem:[%s7372_s15 + $0xe8] sm:$0xff]  ;;  %v311_v1 = vld [vmem:[%s7372_s15 + $0xf0] sm:$0xff] }
  0x23   : > { %247 = vst.msk [vmem:[#allocation2 + $0xa0] sm:$0x3] %vm228_vm1, %v8624_v4  ;;  %250 = vst.msk [vmem:[#allocation2 + $0xb8] sm:$0x3] %vm228_vm1, %v8624_v4  ;;  %v312_v2 = vld [vmem:[%s7372_s15 + $0xf8] sm:$0xff]  ;;  %v5592_v13 = vld [vmem:[%s8619_s1 + $0x60] sm:$0xff]  ;;  %s224_s15 = scalar_lea.vmem %s8623_s5, %s5778_s12 }
  0x24   : > { %253 = vst.msk [vmem:[#allocation2 + $0xd0] sm:$0x3] %vm228_vm1, %v8624_v4  ;;  %256 = vst.msk [vmem:[#allocation2 + $0xe8] sm:$0x3] %vm228_vm1, %v8624_v4  ;;  %v5593_v14 = vld [vmem:[%s8619_s1 + $0x68] sm:$0xff] }
  0x25   : > { %259 = vst.msk [vmem:[#allocation2 + $0x100] sm:$0x3] %vm228_vm1, %v8624_v4  ;;  %262 = vst.msk [vmem:[#allocation2 + $0x118] sm:$0x3] %vm228_vm1, %v8624_v4 }
  0x26   : > { %265 = vst.msk [vmem:[#allocation2 + $0x130] sm:$0x3] %vm228_vm1, %v8624_v4  ;;  %268 = vst.msk [vmem:[#allocation2 + $0x148] sm:$0x3] %vm228_vm1, %v8624_v4 }
  0x27   : > { %271 = vst.msk [vmem:[#allocation2 + $0x160] sm:$0x3] %vm228_vm1, %v8624_v4  ;;  %274 = vst.msk [vmem:[#allocation2 + $0x178] sm:$0x3] %vm228_vm1, %v8624_v4 }
  0x28   : > { %277 = vst.msk [vmem:[#allocation2 + $0x190] sm:$0x3] %vm228_vm1, %v8624_v4  ;;  %280 = vst.msk [vmem:[#allocation2 + $0x1a8] sm:$0x3] %vm228_vm1, %v8624_v4 }
  0x29   : > { %314 = vst.msk [vmem:[#allocation2 + $0x19] sm:$0xff] %vm225_vm0, %v281_v15  ;;  %315 = vst.msk [vmem:[#allocation2 + $0x21] sm:$0xff] %vm225_vm0, %v282_v16 }
  0x2a   : > { %316 = vst.msk [vmem:[#allocation2 + $0x31] sm:$0xff] %vm225_vm0, %v283_v17  ;;  %317 = vst.msk [vmem:[#allocation2 + $0x39] sm:$0xff] %vm225_vm0, %v284_v18  ;;  %v7587_v18 = vpack.c.bf16 %v5593_v14, %v5592_v13 }
  0x2b   : > { %318 = vst.msk [vmem:[#allocation2 + $0x49] sm:$0xff] %vm225_vm0, %v285_v19  ;;  %319 = vst.msk [vmem:[#allocation2 + $0x51] sm:$0xff] %vm225_vm0, %v286_v20 }
  0x2c   : > { %320 = vst.msk [vmem:[#allocation2 + $0x61] sm:$0xff] %vm225_vm0, %v287_v23  ;;  %321 = vst.msk [vmem:[#allocation2 + $0x69] sm:$0xff] %vm225_vm0, %v288_v25 }
  0x2d   : > { %322 = vst.msk [vmem:[#allocation2 + $0x79] sm:$0xff] %vm225_vm0, %v289_v26  ;;  %323 = vst.msk [vmem:[#allocation2 + $0x81] sm:$0xff] %vm225_vm0, %v290_v27 }
  0x2e   : > { %324 = vst.msk [vmem:[#allocation2 + $0x91] sm:$0xff] %vm225_vm0, %v291_v30  ;;  %325 = vst.msk [vmem:[#allocation2 + $0x99] sm:$0xff] %vm225_vm0, %v292_v31 }
  0x2f   : > { %326 = vst.msk [vmem:[#allocation2 + $0xa9] sm:$0xff] %vm225_vm0, %v293_v32  ;;  %327 = vst.msk [vmem:[#allocation2 + $0xb1] sm:$0xff] %vm225_vm0, %v294_v33 }
  0x30   : > { %328 = vst.msk [vmem:[#allocation2 + $0xc1] sm:$0xff] %vm225_vm0, %v295_v34  ;;  %329 = vst.msk [vmem:[#allocation2 + $0xc9] sm:$0xff] %vm225_vm0, %v296_v35  ;;  %v355_v42 = vld [vmem:[#allocation2 + $0x18] sm:$0xff]  ;;  %v356_v43 = vld [vmem:[#allocation2 + $0x20] sm:$0xff] }
  0x31   : > { %330 = vst.msk [vmem:[#allocation2 + $0xd9] sm:$0xff] %vm225_vm0, %v297_v36  ;;  %331 = vst.msk [vmem:[#allocation2 + $0xe1] sm:$0xff] %vm225_vm0, %v298_v37  ;;  %v7433_v44 = vld [vmem:[#allocation2 + $0x30] sm:$0xff]  ;;  %6173 = vmatprep.mubr.msk.f32.mxu1 %vm225_vm0, %v355_v42  ;;  %6326 = vmatprep.mubr.msk.f32.mxu0 %vm225_vm0, %v355_v42  ;;  %v7447_v46 = vld [vmem:[#allocation2 + $0x38] sm:$0xff] }
  0x32   : > { %332 = vst.msk [vmem:[#allocation2 + $0xf1] sm:$0xff] %vm225_vm0, %v299_v38  ;;  %333 = vst.msk [vmem:[#allocation2 + $0xf9] sm:$0xff] %vm225_vm0, %v300_v39  ;;  %6174 = vmatmul.mubr.msk.f32.gmra.mrb[2].mxu1 %vm225_vm0, %v356_v43  ;;  %6327 = vmatmul.mubr.msk.f32.vlgmr.msra.gmra.mrb[0].mxu0 %vm225_vm0, %v356_v43  ;;  %v7451_v47 = vld [vmem:[#allocation2 + $0x48] sm:$0xff]  ;;  %v7462_v48 = vld [vmem:[#allocation2 + $0x50] sm:$0xff] }
  0x33   : > { %334 = vst.msk [vmem:[#allocation2 + $0x109] sm:$0xff] %vm225_vm0, %v301_v40  ;;  %335 = vst.msk [vmem:[#allocation2 + $0x111] sm:$0xff] %vm225_vm0, %v302_v41  ;;  %6779 = vmatpush3.bf16.msra.mxu0 %v7320_v9  ;;  %6176 = vmatprep.mubr.msk.f32.mxu1 %vm225_vm0, %v7433_v44  ;;  %v7464_v49 = vld [vmem:[#allocation2 + $0x60] sm:$0xff]  ;;  %v7482_v55 = vld [vmem:[#allocation2 + $0x68] sm:$0xff] }
  0x34   : > { %6329 = vmatprep.mubr.msk.f32.mxu0 %vm225_vm0, %v7433_v44  ;;  %6781 = vmatprep.subr.bf16.mxu0 %v7437_v45  ;;  %336 = vst.msk [vmem:[#allocation2 + $0x121] sm:$0xff] %vm225_vm0, %v303_v50  ;;  %337 = vst.msk [vmem:[#allocation2 + $0x129] sm:$0xff] %vm225_vm0, %v304_v51  ;;  %v7487_v57 = vld [vmem:[#allocation2 + $0x78] sm:$0xff]  ;;  %v7502_v60 = vld [vmem:[#allocation2 + $0x80] sm:$0xff] }
  0x35   : > { %338 = vst.msk [vmem:[#allocation2 + $0x139] sm:$0xff] %vm225_vm0, %v305_v52  ;;  %339 = vst.msk [vmem:[#allocation2 + $0x141] sm:$0xff] %vm225_vm0, %v306_v53  ;;  %v7504_v61 = vld [vmem:[#allocation2 + $0x90] sm:$0xff]  ;;  %v7514_v62 = vld [vmem:[#allocation2 + $0x98] sm:$0xff] }
  0x36   : > { %6177 = vmatmul.mubr.msk.f32.gmra.mrb[4].mxu1 %vm225_vm0, %v7447_v46  ;;  %6330 = vmatmul.mubr.msk.f32.gmra.mrb[2].mxu0 %vm225_vm0, %v7447_v46  ;;  %340 = vst.msk [vmem:[#allocation2 + $0x151] sm:$0xff] %vm225_vm0, %v307_v54  ;;  %341 = vst.msk [vmem:[#allocation2 + $0x159] sm:$0xff] %vm225_vm0, %v308_v56  ;;  %v7516_v63 = vld [vmem:[#allocation2 + $0xa8] sm:$0xff]  ;;  %v7526_v0 = vld [vmem:[#allocation2 + $0xb0] sm:$0xff] }
  0x37   : > { %6179 = vmatprep.mubr.msk.f32.mxu1 %vm225_vm0, %v7451_v47  ;;  %6332 = vmatprep.mubr.msk.f32.mxu0 %vm225_vm0, %v7451_v47  ;;  %342 = vst.msk [vmem:[#allocation2 + $0x169] sm:$0xff] %vm225_vm0, %v309_v58  ;;  %343 = vst.msk [vmem:[#allocation2 + $0x171] sm:$0xff] %vm225_vm0, %v310_v59  ;;  %v7530_v3 = vld [vmem:[#allocation2 + $0xc0] sm:$0xff]  ;;  %v7542_v5 = vld [vmem:[#allocation2 + $0xc8] sm:$0xff] }
  0x38   : > { %344 = vst.msk [vmem:[#allocation2 + $0x181] sm:$0xff] %vm225_vm0, %v311_v1  ;;  %345 = vst.msk [vmem:[#allocation2 + $0x189] sm:$0xff] %vm225_vm0, %v312_v2  ;;  %v7544_v6 = vld [vmem:[#allocation2 + $0xd8] sm:$0xff]  ;;  %v7554_v7 = vld [vmem:[#allocation2 + $0xe0] sm:$0xff] }
  0x39   : > { %v7556_v9 = vld [vmem:[#allocation2 + $0xf0] sm:$0xff]  ;;  %v7566_v10 = vld [vmem:[#allocation2 + $0xf8] sm:$0xff]  ;;  %v1905_v16 = vld [vmem:[#allocation2 + $0x21] sm:$0xff] }
  0x3a   : > { %6180 = vmatmul.mubr.msk.f32.gmra.mrb[6].mxu1 %vm225_vm0, %v7462_v48  ;;  %6333 = vmatmul.mubr.msk.f32.gmra.mrb[4].mxu0 %vm225_vm0, %v7462_v48  ;;  %v7568_v11 = vld [vmem:[#allocation2 + $0x108] sm:$0xff]  ;;  %v1904_v12 = vld [vmem:[#allocation2 + $0x19] sm:$0xff]  ;;  %v7583_v15 = vld [vmem:[#allocation2 + $0x110] sm:$0xff] }
  0x3b   : > { %6182 = vmatprep.mubr.msk.f32.mxu1 %vm225_vm0, %v7464_v49  ;;  %6335 = vmatprep.mubr.msk.f32.mxu0 %vm225_vm0, %v7464_v49  ;;  %v7585_v17 = vld [vmem:[#allocation2 + $0x120] sm:$0xff]  ;;  %v7589_v19 = vld [vmem:[#allocation2 + $0x31] sm:$0xff]  ;;  %v7597_v20 = vld [vmem:[#allocation2 + $0x128] sm:$0xff] }
  0x3c   : > { %v7599_v21 = vld [vmem:[#allocation2 + $0x39] sm:$0xff]  ;;  %v7605_v23 = vld [vmem:[#allocation2 + $0x49] sm:$0xff]  ;;  %v7618_v26 = vld [vmem:[#allocation2 + $0x51] sm:$0xff] }
  0x3d   : > { %v7603_v22 = vld [vmem:[#allocation2 + $0x138] sm:$0xff]  ;;  %v7616_v25 = vld [vmem:[#allocation2 + $0x140] sm:$0xff]  ;;  %v7620_v27 = vld [vmem:[#allocation2 + $0x150] sm:$0xff] }
  0x3e   : > { %6183 = vmatmul.mubr.msk.f32.gmra.mrb[8].mxu1 %vm225_vm0, %v7482_v55  ;;  %6336 = vmatmul.mubr.msk.f32.gmra.mrb[6].mxu0 %vm225_vm0, %v7482_v55  ;;  %v7622_v28 = vld [vmem:[#allocation2 + $0x61] sm:$0xff]  ;;  %v7632_v29 = vld [vmem:[#allocation2 + $0x158] sm:$0xff]  ;;  %v7634_v30 = vld [vmem:[#allocation2 + $0x69] sm:$0xff] }
  0x3f   : > { %6185 = vmatprep.mubr.msk.f32.mxu1 %vm225_vm0, %v7487_v57  ;;  %6338 = vmatprep.mubr.msk.f32.mxu0 %vm225_vm0, %v7487_v57  ;;  %v7636_v31 = vld [vmem:[#allocation2 + $0x168] sm:$0xff]  ;;  %v7638_v32 = vld [vmem:[#allocation2 + $0x79] sm:$0xff]  ;;  %v7648_v33 = vld [vmem:[#allocation2 + $0x170] sm:$0xff] }
  0x40   : > { %v7650_v34 = vld [vmem:[#allocation2 + $0x81] sm:$0xff]  ;;  %v7652_v36 = vld [vmem:[#allocation2 + $0x91] sm:$0xff]  ;;  %v741_v37 = vld [vmem:[#allocation2 + $0x9] sm:$0xff] }
  0x41   : > { %v740_v35 = vld [vmem:[#allocation2 + $0x1] sm:$0xff]  ;;  %v7661_v38 = vld [vmem:[#allocation2 + $0x99] sm:$0xff]  ;;  %v7663_v39 = vld [vmem:[#allocation2 + $0xa9] sm:$0xff] }
  0x42   : > { %6186 = vmatmul.mubr.msk.f32.gmra.mrb[10].mxu1 %vm225_vm0, %v7502_v60  ;;  %6339 = vmatmul.mubr.msk.f32.gmra.mrb[8].mxu0 %vm225_vm0, %v7502_v60  ;;  %v7671_v40 = vld [vmem:[#allocation2 + $0xb1] sm:$0xff]  ;;  %v7673_v41 = vld [vmem:[#allocation2 + $0xc1] sm:$0xff]  ;;  %v7684_v42 = vld [vmem:[#allocation2 + $0xc9] sm:$0xff] }
  0x43   : > { %6188 = vmatprep.mubr.msk.f32.mxu1 %vm225_vm0, %v7504_v61  ;;  %6341 = vmatprep.mubr.msk.f32.mxu0 %vm225_vm0, %v7504_v61  ;;  %v7686_v43 = vld [vmem:[#allocation2 + $0xd9] sm:$0xff]  ;;  %v7710_v51 = vld [vmem:[#allocation2 + $0x109] sm:$0xff]  ;;  %v7720_v52 = vld [vmem:[#allocation2 + $0x111] sm:$0xff] }
  0x44   : > { %v7708_v50 = vld [vmem:[#allocation2 + $0xf9] sm:$0xff]  ;;  %8656 = vst [vmem:[#allocation6_spill] sm:$0xff] %v7710_v51  ;;  %v7722_v53 = vld [vmem:[#allocation2 + $0x121] sm:$0xff]  ;;  %v7732_v54 = vld [vmem:[#allocation2 + $0x129] sm:$0xff] }
  0x45   : > { %8657 = vst [vmem:[#allocation7_spill] sm:$0xff] %v7722_v53  ;;  %8658 = vst [vmem:[#allocation8_spill] sm:$0xff] %v7732_v54  ;;  %v7734_v56 = vld [vmem:[#allocation2 + $0x139] sm:$0xff]  ;;  %v7744_v58 = vld [vmem:[#allocation2 + $0x141] sm:$0xff] }
  0x46   : > { %6189 = vmatmul.mubr.msk.f32.gmra.mrb[12].mxu1 %vm225_vm0, %v7514_v62  ;;  %6342 = vmatmul.mubr.msk.f32.gmra.mrb[10].mxu0 %vm225_vm0, %v7514_v62  ;;  %8659 = vst [vmem:[#allocation9_spill] sm:$0xff] %v7734_v56  ;;  %8660 = vst [vmem:[#allocation10_spill] sm:$0xff] %v7744_v58  ;;  %v7746_v59 = vld [vmem:[#allocation2 + $0x151] sm:$0xff]  ;;  %v7756_v1 = vld [vmem:[#allocation2 + $0x159] sm:$0xff] }
  0x47   : > { %6191 = vmatprep.mubr.msk.f32.mxu1 %vm225_vm0, %v7516_v63  ;;  %6344 = vmatprep.mubr.msk.f32.mxu0 %vm225_vm0, %v7516_v63  ;;  %8661 = vst [vmem:[#allocation11_spill] sm:$0xff] %v7746_v59  ;;  %8662 = vst [vmem:[#allocation12_spill] sm:$0xff] %v7756_v1  ;;  %v7758_v2 = vld [vmem:[#allocation2 + $0x169] sm:$0xff]  ;;  %v7770_v13 = vld [vmem:[#allocation2 + $0x181] sm:$0xff] }
  0x48   : > { %8663 = vst [vmem:[#allocation13_spill] sm:$0xff] %v7758_v2  ;;  %8665 = vst [vmem:[#allocation15_spill] sm:$0xff] %v7770_v13  ;;  %v7780_v14 = vld [vmem:[#allocation2 + $0x189] sm:$0xff] }
  0x49   : > { %8666 = vst [vmem:[#allocation16_spill] sm:$0xff] %v7780_v14  ;;  %v2293_v4 = vld [vmem:[#allocation2 + $0x22] sm:$0xff] }
  0x4a   : > { %6192 = vmatmul.mubr.msk.f32.gmra.mrb[14].mxu1 %vm225_vm0, %v7526_v0  ;;  %6345 = vmatmul.mubr.msk.f32.gmra.mrb[12].mxu0 %vm225_vm0, %v7526_v0 }
  0x4b   : > { %6194 = vmatprep.mubr.msk.f32.mxu1 %vm225_vm0, %v7530_v3  ;;  %6347 = vmatprep.mubr.msk.f32.mxu0 %vm225_vm0, %v7530_v3 }
  0x4e   : > { %6195 = vmatmul.mubr.msk.f32.gmra.mrb[16].mxu1 %vm225_vm0, %v7542_v5  ;;  %6348 = vmatmul.mubr.msk.f32.gmra.mrb[14].mxu0 %vm225_vm0, %v7542_v5 }
  0x4f   : > { %6197 = vmatprep.mubr.msk.f32.mxu1 %vm225_vm0, %v7544_v6  ;;  %6350 = vmatprep.mubr.msk.f32.mxu0 %vm225_vm0, %v7544_v6 }
  0x52   : > { %6198 = vmatmul.mubr.msk.f32.gmra.mrb[18].mxu1 %vm225_vm0, %v7554_v7  ;;  %6351 = vmatmul.mubr.msk.f32.gmra.mrb[16].mxu0 %vm225_vm0, %v7554_v7 }
  0x53   : > { %6200 = vmatprep.mubr.msk.f32.mxu1 %vm225_vm0, %v7556_v9  ;;  %6353 = vmatprep.mubr.msk.f32.mxu0 %vm225_vm0, %v7556_v9 }
  0x56   : > { %6201 = vmatmul.mubr.msk.f32.gmra.mrb[20].mxu1 %vm225_vm0, %v7566_v10  ;;  %6354 = vmatmul.mubr.msk.f32.gmra.mrb[18].mxu0 %vm225_vm0, %v7566_v10 }
  0x57   : > { %6203 = vmatprep.mubr.msk.f32.mxu1 %vm225_vm0, %v7568_v11  ;;  %6378 = vmatprep.mubr.msk.f32.mxu0 %vm225_vm0, %v1904_v12 }
  0x5a   : > { %6204 = vmatmul.mubr.msk.f32.gmra.mrb[22].mxu1 %vm225_vm0, %v7583_v15  ;;  %6379 = vmatmul.mubr.msk.f32.vlgmr.msra.gmra.mrb[0].mxu0 %vm225_vm0, %v1905_v16 }
  0x5b   : > { %6783 = vmatpush3.bf16.msra.mxu0 %v7437_v45  ;;  %6206 = vmatprep.mubr.msk.f32.mxu1 %vm225_vm0, %v7585_v17  ;;  %v7698_v45 = vld [vmem:[#allocation2 + $0xf1] sm:$0xff] }
  0x5c   : > { %6381 = vmatprep.mubr.msk.f32.mxu0 %vm225_vm0, %v7589_v19  ;;  %6785 = vmatprep.subr.bf16.mxu0 %v7587_v18  ;;  %8655 = vst [vmem:[#allocation5_spill] sm:$0xff] %v7698_v45 }
  0x5e   : > { %6207 = vmatmul.mubr.msk.f32.gmra.mrb[24].mxu1 %vm225_vm0, %v7597_v20  ;;  %6382 = vmatmul.mubr.msk.f32.gmra.mrb[2].mxu0 %vm225_vm0, %v7599_v21 }
  0x5f   : > { %6209 = vmatprep.mubr.msk.f32.mxu1 %vm225_vm0, %v7603_v22  ;;  %6384 = vmatprep.mubr.msk.f32.mxu0 %vm225_vm0, %v7605_v23 }
  0x62   : > { %6210 = vmatmul.mubr.msk.f32.gmra.mrb[26].mxu1 %vm225_vm0, %v7616_v25  ;;  %6385 = vmatmul.mubr.msk.f32.gmra.mrb[4].mxu0 %vm225_vm0, %v7618_v26 }
  0x63   : > { %6212 = vmatprep.mubr.msk.f32.mxu1 %vm225_vm0, %v7620_v27  ;;  %6387 = vmatprep.mubr.msk.f32.mxu0 %vm225_vm0, %v7622_v28 }
  0x66   : > { %6213 = vmatmul.mubr.msk.f32.gmra.mrb[28].mxu1 %vm225_vm0, %v7632_v29  ;;  %6388 = vmatmul.mubr.msk.f32.gmra.mrb[6].mxu0 %vm225_vm0, %v7634_v30 }
  0x67   : > { %6215 = vmatprep.mubr.msk.f32.mxu1 %vm225_vm0, %v7636_v31  ;;  %6390 = vmatprep.mubr.msk.f32.mxu0 %vm225_vm0, %v7638_v32 }
  0x6a   : > { %6216 = vmatmul.mubr.msk.f32.gmra.mrb[30].mxu1 %vm225_vm0, %v7648_v33  ;;  %6391 = vmatmul.mubr.msk.f32.gmra.mrb[8].mxu0 %vm225_vm0, %v7650_v34 }
  0x6b   : > { %6222 = vmatprep.mubr.msk.f32.mxu1 %vm225_vm0, %v740_v35  ;;  %6393 = vmatprep.mubr.msk.f32.mxu0 %vm225_vm0, %v7652_v36  ;;  %v5626_v35 = vld [vmem:[%s8619_s1 + $0x70] sm:$0xff] }
  0x6e   : > { %6223 = vmatmul.mubr.msk.f32.vlgmr.msra.gmra.mrb[0].mxu1 %vm225_vm0, %v741_v37  ;;  %6394 = vmatmul.mubr.msk.f32.gmra.mrb[10].mxu0 %vm225_vm0, %v7661_v38  ;;  %v5627_v37 = vld [vmem:[%s8619_s1 + $0x78] sm:$0xff] }
  0x6f   : > { %6225 = vmatprep.mubr.msk.f32.mxu1 %vm225_vm0, %v1904_v12  ;;  %6396 = vmatprep.mubr.msk.f32.mxu0 %vm225_vm0, %v7663_v39  ;;  %v7768_v12 = vld [vmem:[#allocation2 + $0x171] sm:$0xff] }
  0x70   : > { %6771 = vmatpush3.bf16.msra.mxu1 %v7394_v24  ;;  %v7696_v24 = vld [vmem:[#allocation2 + $0xe1] sm:$0xff]  ;;  %8664 = vst [vmem:[#allocation14_spill] sm:$0xff] %v7768_v12 }
  0x71   : > { %6796 = vmatprep.subr.bf16.mxu1 %v7312_v8 }
  0x72   : > { %6226 = vmatmul.mubr.msk.f32.gmra.mrb[2].mxu1 %vm225_vm0, %v1905_v16  ;;  %6397 = vmatmul.mubr.msk.f32.gmra.mrb[12].mxu0 %vm225_vm0, %v7671_v40  ;;  %v2292_v16 = vld [vmem:[#allocation2 + $0x1a] sm:$0xff] }
  0x73   : > { %6228 = vmatprep.mubr.msk.f32.mxu1 %vm225_vm0, %v7589_v19  ;;  %6399 = vmatprep.mubr.msk.f32.mxu0 %vm225_vm0, %v7673_v41 }
  0x76   : > { %6229 = vmatmul.mubr.msk.f32.gmra.mrb[4].mxu1 %vm225_vm0, %v7599_v21  ;;  %6400 = vmatmul.mubr.msk.f32.gmra.mrb[14].mxu0 %vm225_vm0, %v7684_v42 }
  0x77   : > { %6231 = vmatprep.mubr.msk.f32.mxu1 %vm225_vm0, %v7605_v23  ;;  %6402 = vmatprep.mubr.msk.f32.mxu0 %vm225_vm0, %v7686_v43 }
  0x7a   : > { %6232 = vmatmul.mubr.msk.f32.gmra.mrb[6].mxu1 %vm225_vm0, %v7618_v26  ;;  %6403 = vmatmul.mubr.msk.f32.gmra.mrb[16].mxu0 %vm225_vm0, %v7696_v24 }
  0x7b   : > { %6234 = vmatprep.mubr.msk.f32.mxu1 %vm225_vm0, %v7622_v28  ;;  %6405 = vmatprep.mubr.msk.f32.mxu0 %vm225_vm0, %v7698_v45 }
  0x7e   : > { %6235 = vmatmul.mubr.msk.f32.gmra.mrb[8].mxu1 %vm225_vm0, %v7634_v30  ;;  %6406 = vmatmul.mubr.msk.f32.gmra.mrb[18].mxu0 %vm225_vm0, %v7708_v50 }
  0x7f   : > { %6237 = vmatprep.mubr.msk.f32.mxu1 %vm225_vm0, %v7638_v32  ;;  %6408 = vmatprep.mubr.msk.f32.mxu0 %vm225_vm0, %v7710_v51 }
  0x82   : > { %6238 = vmatmul.mubr.msk.f32.gmra.mrb[10].mxu1 %vm225_vm0, %v7650_v34  ;;  %6409 = vmatmul.mubr.msk.f32.gmra.mrb[20].mxu0 %vm225_vm0, %v7720_v52 }
  0x83   : > { %6240 = vmatprep.mubr.msk.f32.mxu1 %vm225_vm0, %v7652_v36  ;;  %6411 = vmatprep.mubr.msk.f32.mxu0 %vm225_vm0, %v7722_v53 }
  0x86   : > { %6241 = vmatmul.mubr.msk.f32.gmra.mrb[12].mxu1 %vm225_vm0, %v7661_v38  ;;  %6412 = vmatmul.mubr.msk.f32.gmra.mrb[22].mxu0 %vm225_vm0, %v7732_v54 }
  0x87   : > { %6243 = vmatprep.mubr.msk.f32.mxu1 %vm225_vm0, %v7663_v39  ;;  %6414 = vmatprep.mubr.msk.f32.mxu0 %vm225_vm0, %v7734_v56 }
  0x8a   : > { %6244 = vmatmul.mubr.msk.f32.gmra.mrb[14].mxu1 %vm225_vm0, %v7671_v40  ;;  %6415 = vmatmul.mubr.msk.f32.gmra.mrb[24].mxu0 %vm225_vm0, %v7744_v58 }
  0x8b   : > { %6246 = vmatprep.mubr.msk.f32.mxu1 %vm225_vm0, %v7673_v41  ;;  %6417 = vmatprep.mubr.msk.f32.mxu0 %vm225_vm0, %v7746_v59 }
  0x8e   : > { %6247 = vmatmul.mubr.msk.f32.gmra.mrb[16].mxu1 %vm225_vm0, %v7684_v42  ;;  %6418 = vmatmul.mubr.msk.f32.gmra.mrb[26].mxu0 %vm225_vm0, %v7756_v1 }
  0x8f   : > { %6249 = vmatprep.mubr.msk.f32.mxu1 %vm225_vm0, %v7686_v43  ;;  %6420 = vmatprep.mubr.msk.f32.mxu0 %vm225_vm0, %v7758_v2 }
  0x92   : > { %6250 = vmatmul.mubr.msk.f32.gmra.mrb[18].mxu1 %vm225_vm0, %v7696_v24  ;;  %6421 = vmatmul.mubr.msk.f32.gmra.mrb[28].mxu0 %vm225_vm0, %v7768_v12 }
  0x93   : > { %6252 = vmatprep.mubr.msk.f32.mxu1 %vm225_vm0, %v7698_v45  ;;  %6423 = vmatprep.mubr.msk.f32.mxu0 %vm225_vm0, %v7770_v13  ;;  %v7795_v13 = vpack.c.bf16 %v5627_v37, %v5626_v35  ;;  %v7797_v45 = vld [vmem:[#allocation2 + $0x32] sm:$0xff]  ;;  %v7822_v35 = vld [vmem:[#allocation2 + $0x62] sm:$0xff]  ;;  %v7832_v37 = vld [vmem:[#allocation2 + $0x6a] sm:$0xff] }
  0x94   : > { %8667 = vst [vmem:[#allocation17_spill] sm:$0xff] %v7797_v45  ;;  %8671 = vst [vmem:[#allocation21_spill] sm:$0xff] %v7822_v35 }
  0x95   : > { %8672 = vst [vmem:[#allocation22_spill] sm:$0xff] %v7832_v37 }
  0x96   : > { %6253 = vmatmul.mubr.msk.f32.gmra.mrb[20].mxu1 %vm225_vm0, %v7708_v50  ;;  %6424 = vmatmul.mubr.msk.f32.gmra.mrb[30].mxu0 %vm225_vm0, %v7780_v14  ;;  %v7805_v14 = vld [vmem:[#allocation2 + $0x3a] sm:$0xff] }
  0x97   : > { %6255 = vmatprep.mubr.msk.f32.mxu1 %vm225_vm0, %v7710_v51  ;;  %6430 = vmatprep.mubr.msk.f32.mxu0 %vm225_vm0, %v2292_v16  ;;  %8668 = vst [vmem:[#allocation18_spill] sm:$0xff] %v7805_v14  ;;  %v7809_v51 = vld [vmem:[#allocation2 + $0x4a] sm:$0xff] }
  0x98   : > { %8669 = vst [vmem:[#allocation19_spill] sm:$0xff] %v7809_v51 }
  0x9a   : > { %6256 = vmatmul.mubr.msk.f32.gmra.mrb[22].mxu1 %vm225_vm0, %v7720_v52  ;;  %6431 = vmatmul.mubr.msk.f32.vlgmr.msra.gmra.mrb[0].mxu0 %vm225_vm0, %v2293_v4 }
  0x9b   : > { %6787 = vmatpush3.bf16.msra.mxu0 %v7587_v18  ;;  %6258 = vmatprep.mubr.msk.f32.mxu1 %vm225_vm0, %v7722_v53  ;;  %v7820_v18 = vld [vmem:[#allocation2 + $0x52] sm:$0xff]  ;;  %v7857_v53 = vld [vmem:[#allocation2 + $0xaa] sm:$0xff] }
  0x9c   : > { %6433 = vmatprep.mubr.msk.f32.mxu0 %vm225_vm0, %v7797_v45  ;;  %6789 = vmatprep.subr.bf16.mxu0 %v7795_v13  ;;  %8670 = vst [vmem:[#allocation20_spill] sm:$0xff] %v7820_v18  ;;  %8677 = vst [vmem:[#allocation27_spill] sm:$0xff] %v7857_v53 }
  0x9e   : > { %6259 = vmatmul.mubr.msk.f32.gmra.mrb[24].mxu1 %vm225_vm0, %v7732_v54  ;;  %6434 = vmatmul.mubr.msk.f32.gmra.mrb[2].mxu0 %vm225_vm0, %v7805_v14  ;;  %v7846_v54 = vld [vmem:[#allocation2 + $0x92] sm:$0xff] }
  0x9f   : > { %6261 = vmatprep.mubr.msk.f32.mxu1 %vm225_vm0, %v7734_v56  ;;  %6436 = vmatprep.mubr.msk.f32.mxu0 %vm225_vm0, %v7809_v51  ;;  %v7834_v56 = vld [vmem:[#allocation2 + $0x7a] sm:$0xff]  ;;  %8675 = vst [vmem:[#allocation25_spill] sm:$0xff] %v7846_v54 }
  0xa0   : > { %8673 = vst [vmem:[#allocation23_spill] sm:$0xff] %v7834_v56 }
  0xa2   : > { %6262 = vmatmul.mubr.msk.f32.gmra.mrb[26].mxu1 %vm225_vm0, %v7744_v58  ;;  %6437 = vmatmul.mubr.msk.f32.gmra.mrb[4].mxu0 %vm225_vm0, %v7820_v18  ;;  %v1128_v58 = vld [vmem:[#allocation2 + $0x2] sm:$0xff] }
  0xa3   : > { %6264 = vmatprep.mubr.msk.f32.mxu1 %vm225_vm0, %v7746_v59  ;;  %6439 = vmatprep.mubr.msk.f32.mxu0 %vm225_vm0, %v7822_v35  ;;  %v7844_v59 = vld [vmem:[#allocation2 + $0x82] sm:$0xff] }
  0xa4   : > { %8674 = vst [vmem:[#allocation24_spill] sm:$0xff] %v7844_v59 }
  0xa6   : > { %6265 = vmatmul.mubr.msk.f32.gmra.mrb[28].mxu1 %vm225_vm0, %v7756_v1  ;;  %6440 = vmatmul.mubr.msk.f32.gmra.mrb[6].mxu0 %vm225_vm0, %v7832_v37  ;;  %v7855_v1 = vld [vmem:[#allocation2 + $0x9a] sm:$0xff] }
  0xa7   : > { %6267 = vmatprep.mubr.msk.f32.mxu1 %vm225_vm0, %v7758_v2  ;;  %6442 = vmatprep.mubr.msk.f32.mxu0 %vm225_vm0, %v7834_v56  ;;  %v1129_v2 = vld [vmem:[#allocation2 + $0xa] sm:$0xff]  ;;  %8676 = vst [vmem:[#allocation26_spill] sm:$0xff] %v7855_v1 }
  0xaa   : > { %6268 = vmatmul.mubr.msk.f32.gmra.mrb[30].mxu1 %vm225_vm0, %v7768_v12  ;;  %6443 = vmatmul.mubr.msk.f32.gmra.mrb[8].mxu0 %vm225_vm0, %v7844_v59  ;;  %v7865_v12 = vld [vmem:[#allocation2 + $0xb2] sm:$0xff] }
  0xab   : > { %6274 = vmatprep.mubr.msk.f32.mxu1 %vm225_vm0, %v1128_v58  ;;  %6445 = vmatprep.mubr.msk.f32.mxu0 %vm225_vm0, %v7846_v54  ;;  %8678 = vst [vmem:[#allocation28_spill] sm:$0xff] %v7865_v12  ;;  %v7867_v58 = vld [vmem:[#allocation2 + $0xc2] sm:$0xff] }
  0xac   : > { %8679 = vst [vmem:[#allocation29_spill] sm:$0xff] %v7867_v58 }
  0xae   : > { %6275 = vmatmul.mubr.msk.f32.vlgmr.msra.gmra.mrb[0].mxu1 %vm225_vm0, %v1129_v2  ;;  %6446 = vmatmul.mubr.msk.f32.gmra.mrb[10].mxu0 %vm225_vm0, %v7855_v1  ;;  %v7877_v2 = vld [vmem:[#allocation2 + $0xca] sm:$0xff] }
  0xaf   : > { %6277 = vmatprep.mubr.msk.f32.mxu1 %vm225_vm0, %v2292_v16  ;;  %6448 = vmatprep.mubr.msk.f32.mxu0 %vm225_vm0, %v7857_v53  ;;  %8680 = vst [vmem:[#allocation30_spill] sm:$0xff] %v7877_v2  ;;  %v7879_v16 = vld [vmem:[#allocation2 + $0xda] sm:$0xff] }
  0xb0   : > { %6797 = vmatpush3.bf16.msra.mxu1 %v7312_v8  ;;  %8681 = vst [vmem:[#allocation31_spill] sm:$0xff] %v7879_v16  ;;  %v7891_v8 = vld [vmem:[#allocation2 + $0xf2] sm:$0xff] }
  0xb2   : > { %6278 = vmatmul.mubr.msk.f32.gmra.mrb[2].mxu1 %vm225_vm0, %v2293_v4  ;;  %6449 = vmatmul.mubr.msk.f32.gmra.mrb[12].mxu0 %vm225_vm0, %v7865_v12  ;;  %v7889_v4 = vld [vmem:[#allocation2 + $0xe2] sm:$0xff] }
  0xb3   : > { %6280 = vmatprep.mubr.msk.f32.mxu1 %vm225_vm0, %v7797_v45  ;;  %6451 = vmatprep.mubr.msk.f32.mxu0 %vm225_vm0, %v7867_v58  ;;  %v5661_v45 = vld [vmem:[%s8619_s1 + $0x88] sm:$0xff] }
  0xb6   : > { %6281 = vmatmul.mubr.msk.f32.gmra.mrb[4].mxu1 %vm225_vm0, %v7805_v14  ;;  %6452 = vmatmul.mubr.msk.f32.gmra.mrb[14].mxu0 %vm225_vm0, %v7877_v2  ;;  %v7903_v14 = vld [vmem:[#allocation2 + $0x10a] sm:$0xff] }
  0xb7   : > { %6283 = vmatprep.mubr.msk.f32.mxu1 %vm225_vm0, %v7809_v51  ;;  %6454 = vmatprep.mubr.msk.f32.mxu0 %vm225_vm0, %v7879_v16  ;;  %v7901_v51 = vld [vmem:[#allocation2 + $0xfa] sm:$0xff] }
  0xba   : > { %6284 = vmatmul.mubr.msk.f32.gmra.mrb[6].mxu1 %vm225_vm0, %v7820_v18  ;;  %6455 = vmatmul.mubr.msk.f32.gmra.mrb[16].mxu0 %vm225_vm0, %v7889_v4  ;;  %v7915_v18 = vld [vmem:[#allocation2 + $0x122] sm:$0xff] }
  0xbb   : > { %6286 = vmatprep.mubr.msk.f32.mxu1 %vm225_vm0, %v7822_v35  ;;  %6457 = vmatprep.mubr.msk.f32.mxu0 %vm225_vm0, %v7891_v8  ;;  %v7913_v35 = vld [vmem:[#allocation2 + $0x112] sm:$0xff] }
  0xbe   : > { %6287 = vmatmul.mubr.msk.f32.gmra.mrb[8].mxu1 %vm225_vm0, %v7832_v37  ;;  %6458 = vmatmul.mubr.msk.f32.gmra.mrb[18].mxu0 %vm225_vm0, %v7901_v51  ;;  %v7927_v37 = vld [vmem:[#allocation2 + $0x13a] sm:$0xff] }
  0xbf   : > { %6289 = vmatprep.mubr.msk.f32.mxu1 %vm225_vm0, %v7834_v56  ;;  %6460 = vmatprep.mubr.msk.f32.mxu0 %vm225_vm0, %v7903_v14  ;;  %v7925_v56 = vld [vmem:[#allocation2 + $0x12a] sm:$0xff] }
  0xc2   : > { %6290 = vmatmul.mubr.msk.f32.gmra.mrb[10].mxu1 %vm225_vm0, %v7844_v59  ;;  %6461 = vmatmul.mubr.msk.f32.gmra.mrb[20].mxu0 %vm225_vm0, %v7913_v35  ;;  %v7939_v59 = vld [vmem:[#allocation2 + $0x152] sm:$0xff] }
  0xc3   : > { %6292 = vmatprep.mubr.msk.f32.mxu1 %vm225_vm0, %v7846_v54  ;;  %6463 = vmatprep.mubr.msk.f32.mxu0 %vm225_vm0, %v7915_v18  ;;  %v7937_v54 = vld [vmem:[#allocation2 + $0x142] sm:$0xff] }
  0xc6   : > { %6293 = vmatmul.mubr.msk.f32.gmra.mrb[12].mxu1 %vm225_vm0, %v7855_v1  ;;  %6464 = vmatmul.mubr.msk.f32.gmra.mrb[22].mxu0 %vm225_vm0, %v7925_v56  ;;  %v7951_v1 = vld [vmem:[#allocation2 + $0x16a] sm:$0xff] }
  0xc7   : > { %6295 = vmatprep.mubr.msk.f32.mxu1 %vm225_vm0, %v7857_v53  ;;  %6466 = vmatprep.mubr.msk.f32.mxu0 %vm225_vm0, %v7927_v37  ;;  %v7949_v53 = vld [vmem:[#allocation2 + $0x15a] sm:$0xff] }
  0xca   : > { %6296 = vmatmul.mubr.msk.f32.gmra.mrb[14].mxu1 %vm225_vm0, %v7865_v12  ;;  %6467 = vmatmul.mubr.msk.f32.gmra.mrb[24].mxu0 %vm225_vm0, %v7937_v54  ;;  %v7963_v12 = vld [vmem:[#allocation2 + $0x182] sm:$0xff] }
  0xcb   : > { %6298 = vmatprep.mubr.msk.f32.mxu1 %vm225_vm0, %v7867_v58  ;;  %6469 = vmatprep.mubr.msk.f32.mxu0 %vm225_vm0, %v7939_v59  ;;  %v7961_v58 = vld [vmem:[#allocation2 + $0x172] sm:$0xff]  ;;  %8682 = vst [vmem:[#allocation32_spill] sm:$0xff] %v7963_v12 }
  0xce   : > { %6299 = vmatmul.mubr.msk.f32.gmra.mrb[16].mxu1 %vm225_vm0, %v7877_v2  ;;  %6470 = vmatmul.mubr.msk.f32.gmra.mrb[26].mxu0 %vm225_vm0, %v7949_v53  ;;  %v5660_v2 = vld [vmem:[%s8619_s1 + $0x80] sm:$0xff] }
  0xcf   : > { %6301 = vmatprep.mubr.msk.f32.mxu1 %vm225_vm0, %v7879_v16  ;;  %6472 = vmatprep.mubr.msk.f32.mxu0 %vm225_vm0, %v7951_v1  ;;  %v7973_v16 = vld [vmem:[#allocation2 + $0x18a] sm:$0xff] }
  0xd2   : > { %6302 = vmatmul.mubr.msk.f32.gmra.mrb[18].mxu1 %vm225_vm0, %v7889_v4  ;;  %6473 = vmatmul.mubr.msk.f32.gmra.mrb[28].mxu0 %vm225_vm0, %v7961_v58 }
  0xd3   : > { %6304 = vmatprep.mubr.msk.f32.mxu1 %vm225_vm0, %v7891_v8  ;;  %6475 = vmatprep.mubr.msk.f32.mxu0 %vm225_vm0, %v7963_v12  ;;  %v6792_v12 = vpack.c.bf16 %v5661_v45, %v5660_v2 }
  0xd6   : > { %6305 = vmatmul.mubr.msk.f32.gmra.mrb[20].mxu1 %vm225_vm0, %v7901_v51  ;;  %6476 = vmatmul.mubr.msk.f32.gmra.mrb[30].mxu0 %vm225_vm0, %v7973_v16 }
  0xd7   : > { %6307 = vmatprep.mubr.msk.f32.mxu1 %vm225_vm0, %v7903_v14  ;;  %6482 = vmatprep.mubr.msk.f32.mxu0 %vm225_vm0, %v7433_v44  ;;  %v1546_v44 = vld [vmem:[#allocation2 + $0x180] sm:$0xff] }
  0xda   : > { %6308 = vmatmul.mubr.msk.f32.gmra.mrb[22].mxu1 %vm225_vm0, %v7913_v35  ;;  %6483 = vmatmul.mubr.msk.f32.vlgmr.msra.gmra.mrb[0].mxu0 %vm225_vm0, %v7447_v46  ;;  %v1547_v46 = vld [vmem:[#allocation2 + $0x188] sm:$0xff] }
  0xdb   : > { %6791 = vmatpush3.bf16.msra.mxu0 %v7795_v13  ;;  %6310 = vmatprep.mubr.msk.f32.mxu1 %vm225_vm0, %v7915_v18 }
  0xdc   : > { %6485 = vmatprep.mubr.msk.f32.mxu0 %vm225_vm0, %v7451_v47  ;;  %6793 = vmatprep.subr.bf16.mxu0 %v6792_v12  ;;  %v2711_v47 = vld [vmem:[#allocation2 + $0x198] sm:$0xff] }
  0xde   : > { %6311 = vmatmul.mubr.msk.f32.gmra.mrb[24].mxu1 %vm225_vm0, %v7925_v56  ;;  %6486 = vmatmul.mubr.msk.f32.gmra.mrb[2].mxu0 %vm225_vm0, %v7462_v48  ;;  %v2712_v48 = vld [vmem:[#allocation2 + $0x1a0] sm:$0xff] }
  0xdf   : > { %6313 = vmatprep.mubr.msk.f32.mxu1 %vm225_vm0, %v7927_v37  ;;  %6488 = vmatprep.mubr.msk.f32.mxu0 %vm225_vm0, %v7464_v49  ;;  %v8683_v49 = vld [vmem:[#allocation5_spill] sm:$0xff] }
  0xe2   : > { %6314 = vmatmul.mubr.msk.f32.gmra.mrb[26].mxu1 %vm225_vm0, %v7937_v54  ;;  %6489 = vmatmul.mubr.msk.f32.gmra.mrb[4].mxu0 %vm225_vm0, %v7482_v55  ;;  %v8684_v55 = vld [vmem:[#allocation6_spill] sm:$0xff] }
  0xe3   : > { %6316 = vmatprep.mubr.msk.f32.mxu1 %vm225_vm0, %v7939_v59  ;;  %6491 = vmatprep.mubr.msk.f32.mxu0 %vm225_vm0, %v7487_v57  ;;  %v8685_v57 = vld [vmem:[#allocation7_spill] sm:$0xff] }
  0xe6   : > { %6317 = vmatmul.mubr.msk.f32.gmra.mrb[28].mxu1 %vm225_vm0, %v7949_v53  ;;  %6492 = vmatmul.mubr.msk.f32.gmra.mrb[6].mxu0 %vm225_vm0, %v7502_v60  ;;  %v8686_v60 = vld [vmem:[#allocation8_spill] sm:$0xff] }
  0xe7   : > { %6319 = vmatprep.mubr.msk.f32.mxu1 %vm225_vm0, %v7951_v1  ;;  %6494 = vmatprep.mubr.msk.f32.mxu0 %vm225_vm0, %v7504_v61  ;;  %v8687_v61 = vld [vmem:[#allocation9_spill] sm:$0xff] }
  0xea   : > { %6320 = vmatmul.mubr.msk.f32.gmra.mrb[30].mxu1 %vm225_vm0, %v7961_v58  ;;  %6495 = vmatmul.mubr.msk.f32.gmra.mrb[8].mxu0 %vm225_vm0, %v7514_v62  ;;  %v8688_v62 = vld [vmem:[#allocation10_spill] sm:$0xff] }
  0xeb   : > { %6356 = vmatprep.mubr.msk.f32.mxu1 %vm225_vm0, %v7568_v11  ;;  %6497 = vmatprep.mubr.msk.f32.mxu0 %vm225_vm0, %v7516_v63  ;;  %v8689_v63 = vld [vmem:[#allocation11_spill] sm:$0xff] }
  0xee   : > { %6357 = vmatmul.mubr.msk.f32.vlgmr.msra.gmra.mrb[20].mxu1 %vm225_vm0, %v7583_v15  ;;  %6498 = vmatmul.mubr.msk.f32.gmra.mrb[10].mxu0 %vm225_vm0, %v7526_v0  ;;  %v8690_v0 = vld [vmem:[#allocation12_spill] sm:$0xff] }
  0xef   : > { %6359 = vmatprep.mubr.msk.f32.mxu1 %vm225_vm0, %v7585_v17  ;;  %6500 = vmatprep.mubr.msk.f32.mxu0 %vm225_vm0, %v7530_v3  ;;  %v8691_v3 = vld [vmem:[#allocation13_spill] sm:$0xff] }
  0xf2   : > { %6360 = vmatmul.mubr.msk.f32.gmra.mrb[22].mxu1 %vm225_vm0, %v7597_v20  ;;  %6501 = vmatmul.mubr.msk.f32.gmra.mrb[12].mxu0 %vm225_vm0, %v7542_v5  ;;  %v8692_v5 = vld [vmem:[#allocation14_spill] sm:$0xff] }
  0xf3   : > { %6362 = vmatprep.mubr.msk.f32.mxu1 %vm225_vm0, %v7603_v22  ;;  %6503 = vmatprep.mubr.msk.f32.mxu0 %vm225_vm0, %v7544_v6  ;;  %v8693_v6 = vld [vmem:[#allocation15_spill] sm:$0xff] }
  0xf6   : > { %6363 = vmatmul.mubr.msk.f32.gmra.mrb[24].mxu1 %vm225_vm0, %v7616_v25  ;;  %6504 = vmatmul.mubr.msk.f32.gmra.mrb[14].mxu0 %vm225_vm0, %v7554_v7  ;;  %v3099_v7 = vld [vmem:[#allocation2 + $0x199] sm:$0xff] }
  0xf7   : > { %6365 = vmatprep.mubr.msk.f32.mxu1 %vm225_vm0, %v7620_v27  ;;  %6506 = vmatprep.mubr.msk.f32.mxu0 %vm225_vm0, %v7556_v9  ;;  %v8694_v9 = vld [vmem:[#allocation16_spill] sm:$0xff] }
  0xfa   : > { %6366 = vmatmul.mubr.msk.f32.gmra.mrb[26].mxu1 %vm225_vm0, %v7632_v29  ;;  %6507 = vmatmul.mubr.msk.f32.gmra.mrb[16].mxu0 %vm225_vm0, %v7566_v10  ;;  %v3100_v10 = vld [vmem:[#allocation2 + $0x1a1] sm:$0xff] }
  0xfb   : > { %6368 = vmatprep.mubr.msk.f32.mxu1 %vm225_vm0, %v7636_v31  ;;  %6509 = vmatprep.mubr.msk.f32.mxu0 %vm225_vm0, %v7568_v11  ;;  %v8695_v11 = vld [vmem:[#allocation17_spill] sm:$0xff] }
  0xfe   : > { %6369 = vmatmul.mubr.msk.f32.gmra.mrb[28].mxu1 %vm225_vm0, %v7648_v33  ;;  %6510 = vmatmul.mubr.msk.f32.gmra.mrb[18].mxu0 %vm225_vm0, %v7583_v15  ;;  %v8696_v15 = vld [vmem:[#allocation18_spill] sm:$0xff] }
  0xff   : > { %6371 = vmatprep.mubr.msk.f32.mxu1 %vm225_vm0, %v1546_v44  ;;  %6512 = vmatprep.mubr.msk.f32.mxu0 %vm225_vm0, %v7585_v17  ;;  %v8697_v17 = vld [vmem:[#allocation19_spill] sm:$0xff] }
 0x102   : > { %6372 = vmatmul.mubr.msk.f32.gmra.mrb[30].mxu1 %vm225_vm0, %v1547_v46  ;;  %6513 = vmatmul.mubr.msk.f32.gmra.mrb[20].mxu0 %vm225_vm0, %v7597_v20  ;;  %v8699_v20 = vld [vmem:[#allocation21_spill] sm:$0xff] }
 0x103   : > { %6515 = vmatprep.mubr.msk.f32.mxu0 %vm225_vm0, %v7603_v22  ;;  %v8701_v22 = vld [vmem:[#allocation23_spill] sm:$0xff] }
 0x106   : > { %6516 = vmatmul.mubr.msk.f32.gmra.mrb[22].mxu0 %vm225_vm0, %v7616_v25  ;;  %v8703_v25 = vld [vmem:[#allocation25_spill] sm:$0xff] }
 0x107   : > { %6518 = vmatprep.mubr.msk.f32.mxu0 %vm225_vm0, %v7620_v27  ;;  %v8705_v27 = vld [vmem:[#allocation27_spill] sm:$0xff] }
 0x10a   : > { %6519 = vmatmul.mubr.msk.f32.gmra.mrb[24].mxu0 %vm225_vm0, %v7632_v29  ;;  %v8707_v29 = vld [vmem:[#allocation29_spill] sm:$0xff] }
 0x10b   : > { %6521 = vmatprep.mubr.msk.f32.mxu0 %vm225_vm0, %v7636_v31  ;;  %v8709_v31 = vld [vmem:[#allocation31_spill] sm:$0xff] }
 0x10e   : > { %6522 = vmatmul.mubr.msk.f32.gmra.mrb[26].mxu0 %vm225_vm0, %v7648_v33 }
 0x10f   : > { %6524 = vmatprep.mubr.msk.f32.mxu0 %vm225_vm0, %v1546_v44 }
 0x112   : > { %6525 = vmatmul.mubr.msk.f32.gmra.mrb[28].mxu0 %vm225_vm0, %v1547_v46 }
 0x113   : > { %6527 = vmatprep.mubr.msk.f32.mxu0 %vm225_vm0, %v2711_v47 }
 0x116   : > { %6528 = vmatmul.mubr.msk.f32.gmra.mrb[30].mxu0 %vm225_vm0, %v2712_v48 }
 0x117   : > { %6534 = vmatprep.mubr.msk.f32.mxu0 %vm225_vm0, %v7589_v19  ;;  %v8698_v19 = vld [vmem:[#allocation20_spill] sm:$0xff] }
 0x11a   : > { %6535 = vmatmul.mubr.msk.f32.vlgmr.msra.gmra.mrb[0].mxu0 %vm225_vm0, %v7599_v21  ;;  %v8700_v21 = vld [vmem:[#allocation22_spill] sm:$0xff] }
 0x11b   : > { %6795 = vmatpush3.bf16.msra.mxu0 %v6792_v12  ;;  %6537 = vmatprep.mubr.msk.f32.mxu0 %vm225_vm0, %v7605_v23  ;;  %v8702_v23 = vld [vmem:[#allocation24_spill] sm:$0xff] }
 0x11e   : > { %6538 = vmatmul.mubr.msk.f32.gmra.mrb[2].mxu0 %vm225_vm0, %v7618_v26  ;;  %v8704_v26 = vld [vmem:[#allocation26_spill] sm:$0xff] }
 0x11f   : > { %6540 = vmatprep.mubr.msk.f32.mxu0 %vm225_vm0, %v7622_v28  ;;  %v8706_v28 = vld [vmem:[#allocation28_spill] sm:$0xff] }
 0x122   : > { %6541 = vmatmul.mubr.msk.f32.gmra.mrb[4].mxu0 %vm225_vm0, %v7634_v30  ;;  %v8708_v30 = vld [vmem:[#allocation30_spill] sm:$0xff] }
 0x123   : > { %6543 = vmatprep.mubr.msk.f32.mxu0 %vm225_vm0, %v7638_v32 }
 0x126   : > { %6544 = vmatmul.mubr.msk.f32.gmra.mrb[6].mxu0 %vm225_vm0, %v7650_v34 }
 0x127   : > { %6546 = vmatprep.mubr.msk.f32.mxu0 %vm225_vm0, %v7652_v36 }
 0x12a   : > { %6547 = vmatmul.mubr.msk.f32.gmra.mrb[8].mxu0 %vm225_vm0, %v7661_v38 }
 0x12b   : > { %6549 = vmatprep.mubr.msk.f32.mxu0 %vm225_vm0, %v7663_v39 }
 0x12e   : > { %6550 = vmatmul.mubr.msk.f32.gmra.mrb[10].mxu0 %vm225_vm0, %v7671_v40 }
 0x12f   : > { %6552 = vmatprep.mubr.msk.f32.mxu0 %vm225_vm0, %v7673_v41 }
 0x132   : > { %6553 = vmatmul.mubr.msk.f32.gmra.mrb[12].mxu0 %vm225_vm0, %v7684_v42  ;;  %v8710_v42 = vld [vmem:[#allocation32_spill] sm:$0xff] }
 0x133   : > { %6555 = vmatprep.mubr.msk.f32.mxu0 %vm225_vm0, %v7686_v43  ;;  %v3487_v43 = vld [vmem:[#allocation2 + $0x19a] sm:$0xff] }
 0x136   : > { %6556 = vmatmul.mubr.msk.f32.gmra.mrb[14].mxu0 %vm225_vm0, %v7696_v24 }
 0x137   : > { %6558 = vmatprep.mubr.msk.f32.mxu0 %vm225_vm0, %v8683_v49 }
 0x13a   : > { %6559 = vmatmul.mubr.msk.f32.gmra.mrb[16].mxu0 %vm225_vm0, %v7708_v50  ;;  %v3488_v50 = vld [vmem:[#allocation2 + $0x1a2] sm:$0xff] }
 0x13b   : > { %6561 = vmatprep.mubr.msk.f32.mxu0 %vm225_vm0, %v8684_v55 }
 0x13e   : > { %6562 = vmatmul.mubr.msk.f32.gmra.mrb[18].mxu0 %vm225_vm0, %v7720_v52 }
 0x13f   : > { %6564 = vmatprep.mubr.msk.f32.mxu0 %vm225_vm0, %v8685_v57 }
 0x142   : > { %6565 = vmatmul.mubr.msk.f32.gmra.mrb[20].mxu0 %vm225_vm0, %v8686_v60  ;;  %v8313_v60 = vld [vmem:[%s8621_s3 + $0x8] sm:$0xff] }
 0x143   : > { %6567 = vmatprep.mubr.msk.f32.mxu0 %vm225_vm0, %v8687_v61  ;;  %v8319_v61 = vld [vmem:[%s8620_s2] ss:$0 sm:$0xff] }
 0x146   : > { %6568 = vmatmul.mubr.msk.f32.gmra.mrb[22].mxu0 %vm225_vm0, %v8688_v62 }
 0x147   : > { %6570 = vmatprep.mubr.msk.f32.mxu0 %vm225_vm0, %v8689_v63 }
 0x14a   : > { %6571 = vmatmul.mubr.msk.f32.gmra.mrb[24].mxu0 %vm225_vm0, %v8690_v0 }
 0x14b   : > { %6573 = vmatprep.mubr.msk.f32.mxu0 %vm225_vm0, %v8691_v3 }
 0x14e   : > { %6574 = vmatmul.mubr.msk.f32.gmra.mrb[26].mxu0 %vm225_vm0, %v8692_v5 }
 0x14f   : > { %6576 = vmatprep.mubr.msk.f32.mxu0 %vm225_vm0, %v8693_v6 }
 0x152   : > { %6577 = vmatmul.mubr.msk.f32.gmra.mrb[28].mxu0 %vm225_vm0, %v8694_v9 }
 0x153   : > { %6579 = vmatprep.mubr.msk.f32.mxu0 %vm225_vm0, %v3099_v7 }
 0x156   : > { %6580 = vmatmul.mubr.msk.f32.gmra.mrb[30].mxu0 %vm225_vm0, %v3100_v10 }
 0x157   : > { %6586 = vmatprep.mubr.msk.f32.mxu0 %vm225_vm0, %v8695_v11 }
 0x15a   : > { %6587 = vmatmul.mubr.msk.f32.vlgmr.msra.gmra.mrb[0].mxu0 %vm225_vm0, %v8696_v15 }
 0x15b   : > { %6589 = vmatprep.mubr.msk.f32.mxu0 %vm225_vm0, %v8697_v17 }
 0x15e   : > { %6590 = vmatmul.mubr.msk.f32.gmra.mrb[2].mxu0 %vm225_vm0, %v8698_v19 }
 0x15f   : > { %6592 = vmatprep.mubr.msk.f32.mxu0 %vm225_vm0, %v8699_v20 }
 0x162   : > { %6593 = vmatmul.mubr.msk.f32.gmra.mrb[4].mxu0 %vm225_vm0, %v8700_v21 }
 0x163   : > { %6595 = vmatprep.mubr.msk.f32.mxu0 %vm225_vm0, %v8701_v22 }
 0x166   : > { %6596 = vmatmul.mubr.msk.f32.gmra.mrb[6].mxu0 %vm225_vm0, %v8702_v23 }
 0x167   : > { %6598 = vmatprep.mubr.msk.f32.mxu0 %vm225_vm0, %v8703_v25 }
 0x16a   : > { %6599 = vmatmul.mubr.msk.f32.gmra.mrb[8].mxu0 %vm225_vm0, %v8704_v26 }
 0x16b   : > { %6601 = vmatprep.mubr.msk.f32.mxu0 %vm225_vm0, %v8705_v27 }
 0x16e   : > { %6602 = vmatmul.mubr.msk.f32.gmra.mrb[10].mxu0 %vm225_vm0, %v8706_v28 }
 0x16f   : > { %6604 = vmatprep.mubr.msk.f32.mxu0 %vm225_vm0, %v8707_v29 }
 0x172   : > { %6605 = vmatmul.mubr.msk.f32.gmra.mrb[12].mxu0 %vm225_vm0, %v8708_v30 }
 0x173   : > { %6607 = vmatprep.mubr.msk.f32.mxu0 %vm225_vm0, %v8709_v31 }
 0x176   : > { %6608 = vmatmul.mubr.msk.f32.gmra.mrb[14].mxu0 %vm225_vm0, %v7889_v4 }
 0x177   : > { %6610 = vmatprep.mubr.msk.f32.mxu0 %vm225_vm0, %v7891_v8 }
 0x17a   : > { %6611 = vmatmul.mubr.msk.f32.gmra.mrb[16].mxu0 %vm225_vm0, %v7901_v51 }
 0x17b   : > { %6613 = vmatprep.mubr.msk.f32.mxu0 %vm225_vm0, %v7903_v14 }
 0x17e   : > { %6614 = vmatmul.mubr.msk.f32.gmra.mrb[18].mxu0 %vm225_vm0, %v7913_v35 }
 0x17f   : > { %6616 = vmatprep.mubr.msk.f32.mxu0 %vm225_vm0, %v7915_v18  ;;  %v8711_v18 = vmov 0.0  }
 0x180   : > { %3949 = vst.msk [vmem:[#allocation3] sm:$0xff] %vm3893_vm2, %v8711_v18  ;;  %3952 = vst.msk [vmem:[#allocation3 + $0x10] sm:$0xff] %vm3893_vm2, %v8711_v18 }
 0x181   : > { %v8192_v32 = vpop.f32.mrb[0].mxu1  ;;  %3954 = vst.msk [vmem:[#allocation3 + $0x20] sm:$0xff] %vm3893_vm2, %v8711_v18  ;;  %3956 = vst.msk [vmem:[#allocation3 + $0x30] sm:$0xff] %vm3893_vm2, %v8711_v18 }
 0x182   : > { %6617 = vmatmul.mubr.msk.f32.gmra.mrb[20].mxu0 %vm225_vm0, %v7925_v56  ;;  %v8196_v33 = vpop.f32.mrb[1].mxu1  ;;  %3958 = vst.msk [vmem:[#allocation3 + $0x40] sm:$0xff] %vm3893_vm2, %v8711_v18  ;;  %3960 = vst.msk [vmem:[#allocation3 + $0x50] sm:$0xff] %vm3893_vm2, %v8711_v18  ;;  %v6798_v62 = vadd.f32 %v8192_v32, %v8319_v61 }
 0x183   : > { %6619 = vmatprep.mubr.msk.f32.mxu0 %vm225_vm0, %v7927_v37  ;;  %3962 = vst.msk [vmem:[#allocation3 + $0x60] sm:$0xff] %vm3893_vm2, %v8711_v18  ;;  %3964 = vst.msk [vmem:[#allocation3 + $0x70] sm:$0xff] %vm3893_vm2, %v8711_v18  ;;  %v6800_v63 = vadd.f32 %v8319_v61, %v8196_v33 }
 0x184   : > { %3966 = vst.msk [vmem:[#allocation3 + $0x80] sm:$0xff] %vm3893_vm2, %v8711_v18  ;;  %3968 = vst.msk [vmem:[#allocation3 + $0x90] sm:$0xff] %vm3893_vm2, %v8711_v18 }
 0x185   : > { %v8200_v34 = vpop.f32.mrb[2].mxu1  ;;  %3953 = vst.msk [vmem:[#allocation3 + $0x18] sm:$0x3] %vm3950_vm3, %v8711_v18  ;;  %3951 = vst.msk [vmem:[#allocation3 + $0x8] sm:$0x3] %vm3950_vm3, %v8711_v18 }
 0x186   : > { %6620 = vmatmul.mubr.msk.f32.gmra.mrb[22].mxu0 %vm225_vm0, %v7937_v54  ;;  %v8204_v36 = vpop.f32.mrb[3].mxu1  ;;  %3955 = vst.msk [vmem:[#allocation3 + $0x28] sm:$0x3] %vm3950_vm3, %v8711_v18  ;;  %3957 = vst.msk [vmem:[#allocation3 + $0x38] sm:$0x3] %vm3950_vm3, %v8711_v18  ;;  %v6802_v7 = vadd.f32 %v8200_v34, %v8319_v61 }
 0x187   : > { %6622 = vmatprep.mubr.msk.f32.mxu0 %vm225_vm0, %v7939_v59  ;;  %3959 = vst.msk [vmem:[#allocation3 + $0x48] sm:$0x3] %vm3950_vm3, %v8711_v18  ;;  %3961 = vst.msk [vmem:[#allocation3 + $0x58] sm:$0x3] %vm3950_vm3, %v8711_v18  ;;  %v3986_v8 = vld [vmem:[#allocation3] sm:$0xff]  ;;  %v6804_v9 = vadd.f32 %v8319_v61, %v8204_v36 }
 0x188   : > { %3963 = vst.msk [vmem:[#allocation3 + $0x68] sm:$0x3] %vm3950_vm3, %v8711_v18  ;;  %3965 = vst.msk [vmem:[#allocation3 + $0x78] sm:$0x3] %vm3950_vm3, %v8711_v18  ;;  %6636 = vmatprep.mubr.msk.f32.mxu1 %vm3893_vm2, %v3986_v8 }
 0x189   : > { %v8208_v38 = vpop.f32.mrb[4].mxu1  ;;  %3967 = vst.msk [vmem:[#allocation3 + $0x88] sm:$0x3] %vm3950_vm3, %v8711_v18  ;;  %3969 = vst.msk [vmem:[#allocation3 + $0x98] sm:$0x3] %vm3950_vm3, %v8711_v18 }
 0x18a   : > { %6623 = vmatmul.mubr.msk.f32.gmra.mrb[24].mxu0 %vm225_vm0, %v7949_v53  ;;  %v8212_v39 = vpop.f32.mrb[5].mxu1  ;;  %v6806_v19 = vadd.f32 %v8208_v38, %v8319_v61 }
 0x18b   : > { %6625 = vmatprep.mubr.msk.f32.mxu0 %vm225_vm0, %v7951_v1  ;;  %v6808_v22 = vadd.f32 %v8319_v61, %v8212_v39 }
 0x18d   : > { %v8216_v40 = vpop.f32.mrb[6].mxu1 }
 0x18e   : > { %6626 = vmatmul.mubr.msk.f32.gmra.mrb[26].mxu0 %vm225_vm0, %v7961_v58  ;;  %v8220_v41 = vpop.f32.mrb[7].mxu1  ;;  %v6810_v32 = vadd.f32 %v8216_v40, %v8319_v61 }
 0x18f   : > { %6628 = vmatprep.mubr.msk.f32.mxu0 %vm225_vm0, %v8710_v42  ;;  %v6812_v33 = vadd.f32 %v8319_v61, %v8220_v41 }
 0x191   : > { %v8224_v24 = vpop.f32.mrb[8].mxu1 }
 0x192   : > { %6629 = vmatmul.mubr.msk.f32.gmra.mrb[28].mxu0 %vm225_vm0, %v7973_v16  ;;  %v8228_v45 = vpop.f32.mrb[9].mxu1  ;;  %v3994_v16 = vld [vmem:[%s8621_s3] sm:$0xff]  ;;  %v6814_v42 = vadd.f32 %v8224_v24, %v8319_v61 }
 0x193   : > { %6631 = vmatprep.mubr.msk.f32.mxu0 %vm225_vm0, %v3487_v43  ;;  %6634 = vmatprep.subr.mxu1 %v3994_v16  ;;  %v6816_v18 = vadd.f32 %v8319_v61, %v8228_v45 }
 0x194   : > { %6635 = vmatpush3.msra.mxu1 %v3994_v16 }
 0x195   : > { %v8231_v51 = vpop.f32.mrb[10].mxu1  ;;  %6648 = vmatprep.subr.mxu1 %v8313_v60 }
 0x196   : > { %6632 = vmatmul.mubr.msk.f32.gmra.mrb[30].mxu0 %vm225_vm0, %v3488_v50  ;;  %v8234_v52 = vpop.f32.mrb[11].mxu1 }
 0x197   : > { %v6820_v24 = vadd.f32 %v8319_v61, %v8234_v52 }
 0x199   : > { %v8236_v53 = vpop.f32.mrb[12].mxu1 }
 0x19a   : > { %v8238_v54 = vpop.f32.mrb[13].mxu1 }
 0x19d   : > { %v8240_v56 = vpop.f32.mrb[14].mxu1 }
 0x19e   : > { %v8242_v59 = vpop.f32.mrb[15].mxu1 }
 0x1a1   : > { %v8244_v1 = vpop.f32.mrb[16].mxu1 }
 0x1a2   : > { %v8246_v12 = vpop.f32.mrb[17].mxu1 }
 0x1a5   : > { %v8248_v13 = vpop.f32.mrb[18].mxu1 }
 0x1a6   : > { %v8250_v14 = vpop.f32.mrb[19].mxu1 }
 0x1c1   : > { %v8272_v35 = vpop.f32.mrb[20].mxu1 }
 0x1c2   : > { %v8274_v37 = vpop.f32.mrb[21].mxu1 }
 0x1c5   : > { %v8286_v58 = vpop.f32.mrb[22].mxu1 }
 0x1c6   : > { %v8288_v2 = vpop.f32.mrb[23].mxu1 }
 0x1c9   : > { %v8293_v4 = vpop.f32.mrb[24].mxu1 }
 0x1ca   : > { %v8295_v44 = vpop.f32.mrb[25].mxu1 }
 0x1cd   : > { %v8298_v46 = vpop.f32.mrb[26].mxu1 }
 0x1ce   : > { %v8300_v47 = vpop.f32.mrb[27].mxu1 }
 0x1d1   : > { %v8302_v48 = vpop.f32.mrb[28].mxu1 }
 0x1d2   : > { %v8304_v49 = vpop.f32.mrb[29].mxu1 }
 0x1d5   : > { %v8306_v55 = vpop.f32.mrb[30].mxu1 }
 0x1d6   : > { %v8308_v57 = vpop.f32.mrb[31].mxu1 }
 0x22d   : > { %v6588_v0 = vpop.f32.mrb[0].mxu0 }
 0x22e   : > { %v6799_v3 = vadd.f32 %v6798_v62, %v6588_v0  ;;  %v3654_v5 = vpop.f32.mrb[1].mxu0 }
 0x22f   : > { %v6801_v6 = vadd.f32 %v6800_v63, %v3654_v5  ;;  %v6818_v5 = vadd.f32 %v8231_v51, %v8319_v61 }
 0x230   : > { %v3846_v20 = vmax.f32 %v6799_v3, 0.0 }
 0x231   : > { %v6591_v10 = vpop.f32.mrb[2].mxu0  ;;  %v3845_v23 = vmax.f32 %v6801_v6, 0.0 }
 0x232   : > { %v6803_v11 = vadd.f32 %v6802_v7, %v6591_v10  ;;  %v3664_v15 = vpop.f32.mrb[3].mxu0 }
 0x233   : > { %v6805_v17 = vadd.f32 %v6804_v9, %v3664_v15 }
 0x234   : > { %v3848_v21 = vmax.f32 %v6803_v11, 0.0 }
 0x235   : > { %v3847_v25 = vmax.f32 %v6805_v17, 0.0  ;;  %v6594_v26 = vpop.f32.mrb[4].mxu0  ;;  %v6822_v17 = vadd.f32 %v8236_v53, %v8319_v61  ;;  %v6828_v53 = vadd.f32 %v8319_v61, %v8242_v59  ;;  %v6830_v59 = vadd.f32 %v8244_v1, %v8319_v61 }
 0x236   : > { %v3878_v27 = vmax.f32 %v3846_v20, %v3848_v21  ;;  %v6807_v28 = vadd.f32 %v6806_v19, %v6594_v26  ;;  %v3674_v29 = vpop.f32.mrb[5].mxu0  ;;  %v6824_v20 = vadd.f32 %v8319_v61, %v8238_v54  ;;  %v6834_v1 = vadd.f32 %v8248_v13, %v8319_v61 }
 0x237   : > { %v3877_v30 = vmax.f32 %v3845_v23, %v3847_v25  ;;  %v6809_v31 = vadd.f32 %v6808_v22, %v3674_v29  ;;  %v6826_v29 = vadd.f32 %v8240_v56, %v8319_v61  ;;  %v6838_v13 = vadd.f32 %v8272_v35, %v8319_v61 }
 0x238   : > { %3895 = vst.msk [vmem:[#allocation4 + $0x8] sm:$0xff] %vm3893_vm2, %v3878_v27  ;;  %v3850_v43 = vmax.f32 %v6807_v28, 0.0  ;;  %v6844_v35 = vadd.f32 %v8319_v61, %v8288_v2  ;;  %v6848_v2 = vadd.f32 %v8319_v61, %v8295_v44 }
 0x239   : > { %3894 = vst.msk [vmem:[#allocation4] sm:$0xff] %vm3893_vm2, %v3877_v30  ;;  %v6597_v34 = vpop.f32.mrb[6].mxu0  ;;  %v3849_v40 = vmax.f32 %v6809_v31, 0.0 }
 0x23a   : > { %v6811_v36 = vadd.f32 %v6810_v32, %v6597_v34  ;;  %v3684_v38 = vpop.f32.mrb[7].mxu0 }
 0x23b   : > { %v6813_v39 = vadd.f32 %v6812_v33, %v3684_v38  ;;  %v8365_v38 = vld [vmem:[%s8621_s3 + $0x10] sm:$0xff] }
 0x23c   : > { %v3852_v50 = vmax.f32 %v6811_v36, 0.0 }
 0x23d   : > { %v3851_v16 = vmax.f32 %v6813_v39, 0.0  ;;  %v6600_v8 = vpop.f32.mrb[8].mxu0 }
 0x23e   : > { %v3880_v62 = vmax.f32 %v3850_v43, %v3852_v50  ;;  %v6815_v63 = vadd.f32 %v6814_v42, %v6600_v8  ;;  %v3694_v41 = vpop.f32.mrb[9].mxu0  ;;  %v6832_v43 = vadd.f32 %v8319_v61, %v8246_v12  ;;  %v6836_v12 = vadd.f32 %v8319_v61, %v8250_v14 }
 0x23f   : > { %v3879_v0 = vmax.f32 %v3849_v40, %v3851_v16  ;;  %v6817_v3 = vadd.f32 %v6816_v18, %v3694_v41  ;;  %v6840_v14 = vadd.f32 %v8319_v61, %v8274_v37 }
 0x240   : > { %v3910_v6 = vld [vmem:[#allocation4] ss:$2 sm:$0xff]  ;;  %v3926_v7 = vld [vmem:[#allocation4 + $0x1] ss:$2 sm:$0xff]  ;;  %3897 = vst.msk [vmem:[#allocation4 + $0x18] sm:$0xff] %vm3893_vm2, %v3880_v62  ;;  %v3854_v51 = vmax.f32 %v6815_v63, 0.0 }
 0x241   : > { %v3941_v9 = vmax.f32 %v3910_v6, %v3926_v7  ;;  %3896 = vst.msk [vmem:[#allocation4 + $0x10] sm:$0xff] %vm3893_vm2, %v3879_v0  ;;  %v6603_v45 = vpop.f32.mrb[10].mxu0  ;;  %v3853_v21 = vmax.f32 %v6817_v3, 0.0 }
 0x242   : > { %v6819_v10 = vadd.f32 %v6818_v5, %v6603_v45  ;;  %v3704_v11 = vpop.f32.mrb[11].mxu0 }
 0x243   : > { %v6821_v15 = vadd.f32 %v6820_v24, %v3704_v11  ;;  %3971 = vst.msk [vmem:[#allocation3 + $0x11] sm:$0xff] %vm3893_vm2, %v3941_v9 }
 0x244   : > { %v3856_v19 = vmax.f32 %v6819_v10, 0.0 }
 0x245   : > { %v3855_v22 = vmax.f32 %v6821_v15, 0.0  ;;  %v6606_v52 = vpop.f32.mrb[12].mxu0 }
 0x246   : > { %v3882_v23 = vmax.f32 %v3854_v51, %v3856_v19  ;;  %v6823_v25 = vadd.f32 %v6822_v17, %v6606_v52  ;;  %v3714_v26 = vpop.f32.mrb[13].mxu0  ;;  %v6842_v52 = vadd.f32 %v8286_v58, %v8319_v61  ;;  %v6846_v58 = vadd.f32 %v8293_v4, %v8319_v61 }
 0x247   : > { %v3881_v27 = vmax.f32 %v3853_v21, %v3855_v22  ;;  %v6825_v28 = vadd.f32 %v6824_v20, %v3714_v26  ;;  %v6852_v4 = vadd.f32 %v8319_v61, %v8300_v47  ;;  %v6856_v47 = vadd.f32 %v8319_v61, %v8304_v49 }
 0x248   : > { %v3912_v30 = vld [vmem:[#allocation4 + $0x10] ss:$2 sm:$0xff]  ;;  %v3928_v31 = vld [vmem:[#allocation4 + $0x11] ss:$2 sm:$0xff]  ;;  %3899 = vst.msk [vmem:[#allocation4 + $0x28] sm:$0xff] %vm3893_vm2, %v3882_v23  ;;  %v3858_v39 = vmax.f32 %v6823_v25, 0.0 }
 0x249   : > { %v3942_v32 = vmax.f32 %v3912_v30, %v3928_v31  ;;  %3898 = vst.msk [vmem:[#allocation4 + $0x20] sm:$0xff] %vm3893_vm2, %v3881_v27  ;;  %v6609_v54 = vpop.f32.mrb[14].mxu0  ;;  %v3857_v50 = vmax.f32 %v6825_v28, 0.0 }
 0x24a   : > { %v6827_v33 = vadd.f32 %v6826_v29, %v6609_v54  ;;  %v3724_v34 = vpop.f32.mrb[15].mxu0  ;;  %v8360_v36 = vld [vmem:[#allocation3 + $0x10] sm:$0xff] }
 0x24b   : > { %v6829_v56 = vadd.f32 %v6828_v53, %v3724_v34  ;;  %6637 = vmatmul.mubr.msk.f32.vlgmr.msra.gmra.mrb[32].mxu1 %vm3893_vm2, %v8360_v36  ;;  %3972 = vst.msk [vmem:[#allocation3 + $0x21] sm:$0xff] %vm3893_vm2, %v3942_v32 }
 0x24c   : > { %v3860_v42 = vmax.f32 %v6827_v33, 0.0  ;;  %6649 = vmatpush3.msra.mxu1 %v8313_v60 }
 0x24d   : > { %v3859_v18 = vmax.f32 %v6829_v56, 0.0  ;;  %v6612_v40 = vpop.f32.mrb[16].mxu0  ;;  %6662 = vmatprep.subr.mxu1 %v8365_v38 }
 0x24e   : > { %v3884_v16 = vmax.f32 %v3858_v39, %v3860_v42  ;;  %v6831_v8 = vadd.f32 %v6830_v59, %v6612_v40  ;;  %v3734_v62 = vpop.f32.mrb[17].mxu0 }
 0x24f   : > { %v3883_v63 = vmax.f32 %v3857_v50, %v3859_v18  ;;  %v6833_v41 = vadd.f32 %v6832_v43, %v3734_v62  ;;  %v6850_v43 = vadd.f32 %v8298_v46, %v8319_v61  ;;  %v6854_v46 = vadd.f32 %v8302_v48, %v8319_v61 }
 0x250   : > { %v3914_v0 = vld [vmem:[#allocation4 + $0x20] ss:$2 sm:$0xff]  ;;  %v3930_v3 = vld [vmem:[#allocation4 + $0x21] ss:$2 sm:$0xff]  ;;  %3901 = vst.msk [vmem:[#allocation4 + $0x38] sm:$0xff] %vm3893_vm2, %v3884_v16  ;;  %v3862_v45 = vmax.f32 %v6831_v8, 0.0  ;;  %v6860_v48 = vadd.f32 %v8319_v61, %v8308_v57 }
 0x251   : > { %v3943_v60 = vmax.f32 %v3914_v0, %v3930_v3  ;;  %3900 = vst.msk [vmem:[#allocation4 + $0x30] sm:$0xff] %vm3893_vm2, %v3883_v63  ;;  %v6615_v5 = vpop.f32.mrb[18].mxu0  ;;  %v3861_v11 = vmax.f32 %v6833_v41, 0.0 }
 0x252   : > { %v6835_v6 = vadd.f32 %v6834_v1, %v6615_v5  ;;  %v3744_v7 = vpop.f32.mrb[19].mxu0  ;;  %v8382_v24 = vld [vmem:[#allocation3 + $0x20] sm:$0xff] }
 0x253   : > { %3973 = vst.msk [vmem:[#allocation3 + $0x31] sm:$0xff] %vm3893_vm2, %v3943_v60  ;;  %v6837_v9 = vadd.f32 %v6836_v12, %v3744_v7  ;;  %6639 = vmatprep.mubr.msk.f32.mxu1 %vm3893_vm2, %v8382_v24 }
 0x254   : > { %v3864_v10 = vmax.f32 %v6835_v6, 0.0 }
 0x255   : > { %v3863_v15 = vmax.f32 %v6837_v9, 0.0  ;;  %v6618_v17 = vpop.f32.mrb[20].mxu0 }
 0x256   : > { %v3886_v51 = vmax.f32 %v3862_v45, %v3864_v10  ;;  %v6839_v19 = vadd.f32 %v6838_v13, %v6618_v17  ;;  %v3754_v20 = vpop.f32.mrb[21].mxu0  ;;  %v6858_v13 = vadd.f32 %v8306_v55, %v8319_v61 }
 0x257   : > { %v3885_v21 = vmax.f32 %v3861_v11, %v3863_v15  ;;  %v6841_v22 = vadd.f32 %v6840_v14, %v3754_v20 }
 0x258   : > { %v3916_v23 = vld [vmem:[#allocation4 + $0x30] ss:$2 sm:$0xff]  ;;  %v3932_v25 = vld [vmem:[#allocation4 + $0x31] ss:$2 sm:$0xff]  ;;  %3903 = vst.msk [vmem:[#allocation4 + $0x48] sm:$0xff] %vm3893_vm2, %v3886_v51  ;;  %v3866_v31 = vmax.f32 %v6839_v19, 0.0 }
 0x259   : > { %v3944_v26 = vmax.f32 %v3916_v23, %v3932_v25  ;;  %3902 = vst.msk [vmem:[#allocation4 + $0x40] sm:$0xff] %vm3893_vm2, %v3885_v21  ;;  %v6621_v37 = vpop.f32.mrb[22].mxu0  ;;  %v3865_v32 = vmax.f32 %v6841_v22, 0.0 }
 0x25a   : > { %v6843_v27 = vadd.f32 %v6842_v52, %v6621_v37  ;;  %v3764_v28 = vpop.f32.mrb[23].mxu0  ;;  %v8397_v29 = vld [vmem:[#allocation3 + $0x30] sm:$0xff] }
 0x25b   : > { %3974 = vst.msk [vmem:[#allocation3 + $0x41] sm:$0xff] %vm3893_vm2, %v3944_v26  ;;  %v6845_v30 = vadd.f32 %v6844_v35, %v3764_v28  ;;  %6640 = vmatmul.mubr.msk.f32.gmra.mrb[34].mxu1 %vm3893_vm2, %v8397_v29 }
 0x25c   : > { %v3868_v53 = vmax.f32 %v6843_v27, 0.0  ;;  %v4132_v27 = vld [vmem:[#allocation3 + $0x1] sm:$0xff] }
 0x25d   : > { %v3867_v54 = vmax.f32 %v6845_v30, 0.0  ;;  %v6624_v33 = vpop.f32.mrb[24].mxu0  ;;  %v4133_v30 = vld [vmem:[#allocation3 + $0x11] sm:$0xff] }
 0x25e   : > { %v3888_v34 = vmax.f32 %v3866_v31, %v3868_v53  ;;  %v6847_v56 = vadd.f32 %v6846_v58, %v6624_v33  ;;  %v3774_v59 = vpop.f32.mrb[25].mxu0  ;;  %v5721_v58 = vld [vmem:[%s8621_s3 + $0x18] sm:$0xff]  ;;  %v8454_v53 = vld [vmem:[#allocation3 + $0x31] sm:$0xff] }
 0x25f   : > { %v3887_v39 = vmax.f32 %v3865_v32, %v3867_v54  ;;  %v6849_v42 = vadd.f32 %v6848_v2, %v3774_v59  ;;  %v8449_v31 = vld [vmem:[#allocation3 + $0x21] sm:$0xff] }
 0x260   : > { %v3918_v50 = vld [vmem:[#allocation4 + $0x40] ss:$2 sm:$0xff]  ;;  %v3934_v18 = vld [vmem:[#allocation4 + $0x41] ss:$2 sm:$0xff]  ;;  %3905 = vst.msk [vmem:[#allocation4 + $0x58] sm:$0xff] %vm3893_vm2, %v3888_v34  ;;  %v3870_v41 = vmax.f32 %v6847_v56, 0.0 }
 0x261   : > { %v3945_v40 = vmax.f32 %v3918_v50, %v3934_v18  ;;  %3904 = vst.msk [vmem:[#allocation4 + $0x50] sm:$0xff] %vm3893_vm2, %v3887_v39  ;;  %v6627_v44 = vpop.f32.mrb[26].mxu0  ;;  %v3869_v0 = vmax.f32 %v6849_v42, 0.0  ;;  %v4279_v54 = vld [vmem:[#allocation3 + $0x2] sm:$0xff]  ;;  %v4280_v34 = vld [vmem:[#allocation3 + $0x12] sm:$0xff] }
 0x262   : > { %v6851_v16 = vadd.f32 %v6850_v43, %v6627_v44  ;;  %v3784_v8 = vpop.f32.mrb[27].mxu0  ;;  %v8412_v62 = vld [vmem:[#allocation3 + $0x40] sm:$0xff]  ;;  %v5730_v56 = vld [vmem:[%s8621_s3 + $0x20] sm:$0xff] }
 0x263   : > { %3975 = vst.msk [vmem:[#allocation3 + $0x51] sm:$0xff] %vm3893_vm2, %v3945_v40  ;;  %v6853_v63 = vadd.f32 %v6852_v4, %v3784_v8  ;;  %6642 = vmatprep.mubr.msk.f32.mxu1 %vm3893_vm2, %v8412_v62  ;;  %v8458_v2 = vld [vmem:[#allocation3 + $0x41] sm:$0xff]  ;;  %v8483_v39 = vld [vmem:[#allocation3 + $0x32] sm:$0xff] }
 0x264   : > { %v3872_v1 = vmax.f32 %v6851_v16, 0.0  ;;  %v8479_v59 = vld [vmem:[#allocation3 + $0x22] sm:$0xff]  ;;  %v5739_v4 = vld [vmem:[%s8621_s3 + $0x28] sm:$0xff] }
 0x265   : > { %v3871_v3 = vmax.f32 %v6853_v63, 0.0  ;;  %v6630_v12 = vpop.f32.mrb[28].mxu0  ;;  %v8487_v42 = vld [vmem:[#allocation3 + $0x42] sm:$0xff]  ;;  %v5766_v63 = vld [vmem:[%s8621_s3 + $0x40] sm:$0xff] }
 0x266   : > { %v3890_v60 = vmax.f32 %v3870_v41, %v3872_v1  ;;  %v6855_v5 = vadd.f32 %v6854_v46, %v6630_v12  ;;  %v3794_v6 = vpop.f32.mrb[29].mxu0  ;;  %v5748_v40 = vld [vmem:[%s8621_s3 + $0x30] sm:$0xff]  ;;  %v5757_v16 = vld [vmem:[%s8621_s3 + $0x38] sm:$0xff]  ;;  %v5694_v46 = vld [vmem:[%s8622_s4] ss:$0 sm:$0xff] }
 0x267   : > { %v3889_v7 = vmax.f32 %v3869_v0, %v3871_v3  ;;  %v6857_v9 = vadd.f32 %v6856_v47, %v3794_v6 }
 0x268   : > { %v3920_v45 = vld [vmem:[#allocation4 + $0x50] ss:$2 sm:$0xff]  ;;  %v3936_v10 = vld [vmem:[#allocation4 + $0x51] ss:$2 sm:$0xff]  ;;  %3907 = vst.msk [vmem:[#allocation4 + $0x68] sm:$0xff] %vm3893_vm2, %v3890_v60  ;;  %v3874_v55 = vmax.f32 %v6855_v5, 0.0 }
 0x269   : > { %v3946_v14 = vmax.f32 %v3920_v45, %v3936_v10  ;;  %3906 = vst.msk [vmem:[#allocation4 + $0x60] sm:$0xff] %vm3893_vm2, %v3889_v7  ;;  %v6633_v49 = vpop.f32.mrb[30].mxu0  ;;  %v3873_v20 = vmax.f32 %v6857_v9, 0.0 }
 0x26a   : > { %v6859_v11 = vadd.f32 %v6858_v13, %v6633_v49  ;;  %v3804_v15 = vpop.f32.mrb[31].mxu0  ;;  %v8427_v17 = vld [vmem:[#allocation3 + $0x50] sm:$0xff] }
 0x26b   : > { %3976 = vst.msk [vmem:[#allocation3 + $0x61] sm:$0xff] %vm3893_vm2, %v3946_v14  ;;  %v6861_v51 = vadd.f32 %v6860_v48, %v3804_v15  ;;  %6643 = vmatmul.mubr.msk.f32.gmra.mrb[36].mxu1 %vm3893_vm2, %v8427_v17  ;;  %v8462_v32 = vld [vmem:[#allocation3 + $0x51] sm:$0xff] }
 0x26c   : > { %v3876_v19 = vmax.f32 %v6859_v11, 0.0  ;;  %v8491_v43 = vld [vmem:[#allocation3 + $0x52] sm:$0xff] }
 0x26d   : > { %v3875_v21 = vmax.f32 %v6861_v51, 0.0 }
 0x26e   : > { %v3892_v22 = vmax.f32 %v3874_v55, %v3876_v19 }
 0x26f   : > { %v3891_v57 = vmax.f32 %v3873_v20, %v3875_v21 }
 0x270   : > { %v3922_v61 = vld [vmem:[#allocation4 + $0x60] ss:$2 sm:$0xff]  ;;  %v3938_v52 = vld [vmem:[#allocation4 + $0x61] ss:$2 sm:$0xff]  ;;  %3909 = vst.msk [vmem:[#allocation4 + $0x78] sm:$0xff] %vm3893_vm2, %v3892_v22 }
 0x271   : > { %v3947_v23 = vmax.f32 %v3922_v61, %v3938_v52  ;;  %3908 = vst.msk [vmem:[#allocation4 + $0x70] sm:$0xff] %vm3893_vm2, %v3891_v57 }
 0x272   : > { %v8434_v25 = vld [vmem:[#allocation3 + $0x60] sm:$0xff] }
 0x273   : > { %3977 = vst.msk [vmem:[#allocation3 + $0x71] sm:$0xff] %vm3893_vm2, %v3947_v23  ;;  %6645 = vmatprep.mubr.msk.f32.mxu1 %vm3893_vm2, %v8434_v25  ;;  %v8495_v50 = vld [vmem:[#allocation3 + $0x62] sm:$0xff] }
 0x278   : > { %v3924_v35 = vld [vmem:[#allocation4 + $0x70] ss:$2 sm:$0xff]  ;;  %v3940_v26 = vld [vmem:[#allocation4 + $0x71] ss:$2 sm:$0xff] }
 0x279   : > { %v3948_v37 = vmax.f32 %v3924_v35, %v3940_v26 }
 0x27a   : > { %v8439_v28 = vld [vmem:[#allocation3 + $0x70] sm:$0xff] }
 0x27b   : > { %3978 = vst.msk [vmem:[#allocation3 + $0x81] sm:$0xff] %vm3893_vm2, %v3948_v37  ;;  %6646 = vmatmul.mubr.msk.f32.gmra.mrb[38].mxu1 %vm3893_vm2, %v8439_v28  ;;  %v8470_v33 = vld [vmem:[#allocation3 + $0x71] sm:$0xff] }
 0x27c   : > { %6650 = vmatprep.mubr.msk.f32.mxu1 %vm3893_vm2, %v4132_v27  ;;  %v8499_v18 = vld [vmem:[#allocation3 + $0x72] sm:$0xff] }
 0x27f   : > { %6651 = vmatmul.mubr.msk.f32.vlgmr.msra.gmra.mrb[32].mxu1 %vm3893_vm2, %v4133_v30 }
 0x280   : > { %6663 = vmatpush3.msra.mxu1 %v8365_v38  ;;  %6653 = vmatprep.mubr.msk.f32.mxu1 %vm3893_vm2, %v8449_v31  ;;  %v8466_v38 = vld [vmem:[#allocation3 + $0x61] sm:$0xff] }
 0x281   : > { %6676 = vmatprep.subr.mxu1 %v5721_v58 }
 0x282   : > { %v4580_v44 = vld [vmem:[#allocation3 + $0x81] sm:$0xff] }
 0x283   : > { %6654 = vmatmul.mubr.msk.f32.gmra.mrb[34].mxu1 %vm3893_vm2, %v8454_v53  ;;  %v4727_v8 = vld [vmem:[#allocation3 + $0x82] sm:$0xff] }
 0x284   : > { %6656 = vmatprep.mubr.msk.f32.mxu1 %vm3893_vm2, %v8458_v2 }
 0x287   : > { %6657 = vmatmul.mubr.msk.f32.gmra.mrb[36].mxu1 %vm3893_vm2, %v8462_v32 }
 0x288   : > { %6659 = vmatprep.mubr.msk.f32.mxu1 %vm3893_vm2, %v8466_v38 }
 0x28b   : > { %6660 = vmatmul.mubr.msk.f32.gmra.mrb[38].mxu1 %vm3893_vm2, %v8470_v33 }
 0x28c   : > { %6664 = vmatprep.mubr.msk.f32.mxu1 %vm3893_vm2, %v4279_v54 }
 0x28f   : > { %6665 = vmatmul.mubr.msk.f32.vlgmr.msra.gmra.mrb[32].mxu1 %vm3893_vm2, %v4280_v34 }
 0x290   : > { %6677 = vmatpush3.msra.mxu1 %v5721_v58  ;;  %6667 = vmatprep.mubr.msk.f32.mxu1 %vm3893_vm2, %v8479_v59 }
 0x291   : > { %6690 = vmatprep.subr.mxu1 %v5730_v56 }
 0x293   : > { %6668 = vmatmul.mubr.msk.f32.gmra.mrb[34].mxu1 %vm3893_vm2, %v8483_v39 }
 0x294   : > { %6670 = vmatprep.mubr.msk.f32.mxu1 %vm3893_vm2, %v8487_v42 }
 0x297   : > { %6671 = vmatmul.mubr.msk.f32.gmra.mrb[36].mxu1 %vm3893_vm2, %v8491_v43 }
 0x298   : > { %6673 = vmatprep.mubr.msk.f32.mxu1 %vm3893_vm2, %v8495_v50 }
 0x29b   : > { %6674 = vmatmul.mubr.msk.f32.gmra.mrb[38].mxu1 %vm3893_vm2, %v8499_v18 }
 0x29c   : > { %6678 = vmatprep.mubr.msk.f32.mxu1 %vm3893_vm2, %v8360_v36  ;;  %v4433_v36 = vld [vmem:[#allocation3 + $0x80] sm:$0xff] }
 0x29f   : > { %6679 = vmatmul.mubr.msk.f32.vlgmr.msra.gmra.mrb[32].mxu1 %vm3893_vm2, %v8382_v24 }
 0x2a0   : > { %6691 = vmatpush3.msra.mxu1 %v5730_v56  ;;  %6681 = vmatprep.mubr.msk.f32.mxu1 %vm3893_vm2, %v8397_v29 }
 0x2a1   : > { %6704 = vmatprep.subr.mxu1 %v5739_v4 }
 0x2a3   : > { %6682 = vmatmul.mubr.msk.f32.gmra.mrb[34].mxu1 %vm3893_vm2, %v8412_v62 }
 0x2a4   : > { %6684 = vmatprep.mubr.msk.f32.mxu1 %vm3893_vm2, %v8427_v17 }
 0x2a7   : > { %6685 = vmatmul.mubr.msk.f32.gmra.mrb[36].mxu1 %vm3893_vm2, %v8434_v25 }
 0x2a8   : > { %6687 = vmatprep.mubr.msk.f32.mxu1 %vm3893_vm2, %v8439_v28 }
 0x2ab   : > { %6688 = vmatmul.mubr.msk.f32.gmra.mrb[38].mxu1 %vm3893_vm2, %v4433_v36 }
 0x2ac   : > { %6692 = vmatprep.mubr.msk.f32.mxu1 %vm3893_vm2, %v4133_v30 }
 0x2af   : > { %6693 = vmatmul.mubr.msk.f32.vlgmr.msra.gmra.mrb[32].mxu1 %vm3893_vm2, %v8449_v31 }
 0x2b0   : > { %6705 = vmatpush3.msra.mxu1 %v5739_v4  ;;  %6695 = vmatprep.mubr.msk.f32.mxu1 %vm3893_vm2, %v8454_v53 }
 0x2b1   : > { %6718 = vmatprep.subr.mxu1 %v5748_v40 }
 0x2b3   : > { %6696 = vmatmul.mubr.msk.f32.gmra.mrb[34].mxu1 %vm3893_vm2, %v8458_v2 }
 0x2b4   : > { %6698 = vmatprep.mubr.msk.f32.mxu1 %vm3893_vm2, %v8462_v32 }
 0x2b7   : > { %6699 = vmatmul.mubr.msk.f32.gmra.mrb[36].mxu1 %vm3893_vm2, %v8466_v38 }
 0x2b8   : > { %6701 = vmatprep.mubr.msk.f32.mxu1 %vm3893_vm2, %v8470_v33 }
 0x2bb   : > { %6702 = vmatmul.mubr.msk.f32.gmra.mrb[38].mxu1 %vm3893_vm2, %v4580_v44 }
 0x2bc   : > { %6706 = vmatprep.mubr.msk.f32.mxu1 %vm3893_vm2, %v4280_v34 }
 0x2bf   : > { %6707 = vmatmul.mubr.msk.f32.vlgmr.msra.gmra.mrb[32].mxu1 %vm3893_vm2, %v8479_v59 }
 0x2c0   : > { %6719 = vmatpush3.msra.mxu1 %v5748_v40  ;;  %6709 = vmatprep.mubr.msk.f32.mxu1 %vm3893_vm2, %v8483_v39 }
 0x2c1   : > { %6732 = vmatprep.subr.mxu1 %v5757_v16 }
 0x2c3   : > { %6710 = vmatmul.mubr.msk.f32.gmra.mrb[34].mxu1 %vm3893_vm2, %v8487_v42 }
 0x2c4   : > { %6712 = vmatprep.mubr.msk.f32.mxu1 %vm3893_vm2, %v8491_v43 }
 0x2c7   : > { %6713 = vmatmul.mubr.msk.f32.gmra.mrb[36].mxu1 %vm3893_vm2, %v8495_v50 }
 0x2c8   : > { %6715 = vmatprep.mubr.msk.f32.mxu1 %vm3893_vm2, %v8499_v18 }
 0x2cb   : > { %6716 = vmatmul.mubr.msk.f32.gmra.mrb[38].mxu1 %vm3893_vm2, %v4727_v8 }
 0x2cc   : > { %6720 = vmatprep.mubr.msk.f32.mxu1 %vm3893_vm2, %v8382_v24  ;;  %v4875_v24 = vld [vmem:[#allocation3 + $0x90] sm:$0xff] }
 0x2cf   : > { %6721 = vmatmul.mubr.msk.f32.vlgmr.msra.gmra.mrb[32].mxu1 %vm3893_vm2, %v8397_v29  ;;  %v5022_v29 = vld [vmem:[#allocation3 + $0x91] sm:$0xff] }
 0x2d0   : > { %6733 = vmatpush3.msra.mxu1 %v5757_v16  ;;  %6723 = vmatprep.mubr.msk.f32.mxu1 %vm3893_vm2, %v8412_v62  ;;  %v5169_v62 = vld [vmem:[#allocation3 + $0x92] sm:$0xff] }
 0x2d1   : > { %6746 = vmatprep.subr.mxu1 %v5766_v63 }
 0x2d3   : > { %6724 = vmatmul.mubr.msk.f32.gmra.mrb[34].mxu1 %vm3893_vm2, %v8427_v17 }
 0x2d4   : > { %6726 = vmatprep.mubr.msk.f32.mxu1 %vm3893_vm2, %v8434_v25 }
 0x2d7   : > { %6727 = vmatmul.mubr.msk.f32.gmra.mrb[36].mxu1 %vm3893_vm2, %v8439_v28 }
 0x2d8   : > { %6729 = vmatprep.mubr.msk.f32.mxu1 %vm3893_vm2, %v4433_v36 }
 0x2db   : > { %6730 = vmatmul.mubr.msk.f32.gmra.mrb[38].mxu1 %vm3893_vm2, %v4875_v24 }
 0x2dc   : > { %6734 = vmatprep.mubr.msk.f32.mxu1 %vm3893_vm2, %v8449_v31 }
 0x2df   : > { %6735 = vmatmul.mubr.msk.f32.vlgmr.msra.gmra.mrb[32].mxu1 %vm3893_vm2, %v8454_v53 }
 0x2e0   : > { %6747 = vmatpush3.msra.mxu1 %v5766_v63  ;;  %6737 = vmatprep.mubr.msk.f32.mxu1 %vm3893_vm2, %v8458_v2 }
 0x2e3   : > { %6738 = vmatmul.mubr.msk.f32.gmra.mrb[34].mxu1 %vm3893_vm2, %v8462_v32 }
 0x2e4   : > { %6740 = vmatprep.mubr.msk.f32.mxu1 %vm3893_vm2, %v8466_v38 }
 0x2e7   : > { %6741 = vmatmul.mubr.msk.f32.gmra.mrb[36].mxu1 %vm3893_vm2, %v8470_v33 }
 0x2e8   : > { %6743 = vmatprep.mubr.msk.f32.mxu1 %vm3893_vm2, %v4580_v44 }
 0x2eb   : > { %6744 = vmatmul.mubr.msk.f32.gmra.mrb[38].mxu1 %vm3893_vm2, %v5022_v29 }
 0x2ec   : > { %6748 = vmatprep.mubr.msk.f32.mxu1 %vm3893_vm2, %v8479_v59 }
 0x2ef   : > { %6749 = vmatmul.mubr.msk.f32.vlgmr.msra.gmra.mrb[32].mxu1 %vm3893_vm2, %v8483_v39 }
 0x2f0   : > { %6751 = vmatprep.mubr.msk.f32.mxu1 %vm3893_vm2, %v8487_v42 }
 0x2f3   : > { %6752 = vmatmul.mubr.msk.f32.gmra.mrb[34].mxu1 %vm3893_vm2, %v8491_v43 }
 0x2f4   : > { %6754 = vmatprep.mubr.msk.f32.mxu1 %vm3893_vm2, %v8495_v50 }
 0x2f7   : > { %6755 = vmatmul.mubr.msk.f32.gmra.mrb[36].mxu1 %vm3893_vm2, %v8499_v18 }
 0x2f8   : > { %6757 = vmatprep.mubr.msk.f32.mxu1 %vm3893_vm2, %v4727_v8 }
 0x2fb   : > { %6758 = vmatmul.mubr.msk.f32.gmra.mrb[38].mxu1 %vm3893_vm2, %v5169_v62 }
 0x3c2   : > { %v6750_v41 = vpop.f32.mrb[32].mxu1 }
 0x3c3   : > { %v6862_v1 = vadd.f32 %v6750_v41, %v5694_v46  ;;  %v5262_v47 = vpop.f32.mrb[33].mxu1 }
 0x3c4   : > { %v6863_v0 = vadd.f32 %v5694_v46, %v5262_v47 }
 0x3c5   : > { %v5310_v3 = vmax.f32 %v6862_v1, 0.0 }
 0x3c6   : > { %v5309_v12 = vmax.f32 %v6863_v0, 0.0  ;;  %v6753_v60 = vpop.f32.mrb[34].mxu1 }
 0x3c7   : > { %5318 = vst.msk [vmem:[%s224_s15 + $0x8] sm:$0xff] %vm3893_vm2, %v5310_v3  ;;  %v6864_v5 = vadd.f32 %v6753_v60, %v5694_v46  ;;  %v5272_v6 = vpop.f32.mrb[35].mxu1 }
 0x3c8   : > { %5317 = vst.msk [vmem:[%s224_s15] sm:$0xff] %vm3893_vm2, %v5309_v12  ;;  %v6865_v7 = vadd.f32 %v5694_v46, %v5272_v6 }
 0x3c9   : > { %v5312_v9 = vmax.f32 %v6864_v5, 0.0 }
 0x3ca   : > { %v5311_v13 = vmax.f32 %v6865_v7, 0.0  ;;  %v6756_v45 = vpop.f32.mrb[36].mxu1 }
 0x3cb   : > { %5320 = vst.msk [vmem:[%s224_s15 + $0x18] sm:$0xff] %vm3893_vm2, %v5312_v9  ;;  %v6866_v10 = vadd.f32 %v6756_v45, %v5694_v46  ;;  %v5282_v48 = vpop.f32.mrb[37].mxu1 }
 0x3cc   : > { %5319 = vst.msk [vmem:[%s224_s15 + $0x10] sm:$0xff] %vm3893_vm2, %v5311_v13  ;;  %v6867_v14 = vadd.f32 %v5694_v46, %v5282_v48 }
 0x3cd   : > { %v5314_v49 = vmax.f32 %v6866_v10, 0.0 }
 0x3ce   : > { %v5313_v11 = vmax.f32 %v6867_v14, 0.0  ;;  %v6759_v15 = vpop.f32.mrb[38].mxu1 }
 0x3cf   : > { %5322 = vst.msk [vmem:[%s224_s15 + $0x28] sm:$0xff] %vm3893_vm2, %v5314_v49  ;;  %v6868_v17 = vadd.f32 %v6759_v15, %v5694_v46  ;;  %v5292_v51 = vpop.f32.mrb[39].mxu1 }
 0x3d0   : > { %5321 = vst.msk [vmem:[%s224_s15 + $0x20] sm:$0xff] %vm3893_vm2, %v5313_v11  ;;  %v6869_v55 = vadd.f32 %v5694_v46, %v5292_v51 }
 0x3d1   : > { %v5316_v19 = vmax.f32 %v6868_v17, 0.0 }
 0x3d2   : > { %v5315_v20 = vmax.f32 %v6869_v55, 0.0 }
 0x3d3   : > { %5324 = vst.msk [vmem:[%s224_s15 + $0x38] sm:$0xff] %vm3893_vm2, %v5316_v19 }
 0x3d4   : > { %5323 = vst.msk [vmem:[%s224_s15 + $0x30] sm:$0xff] %vm3893_vm2, %v5315_v20 }
 0x3d5 PF: > { %s15_s18 = sadd.s32 1, %s7173_s18  }
 0x3d6   : > { %p12_p4 = scmp.ge.s32.totalorder %s15_s18, 4  }
 0x3d8   :  { %14 = sbr.rel (!%p12_p4) target bundleno = 1 (0x1), region = 105 }

</bundles_post_ra>
